<compile_context>
chip_gen: v6e
topology: v6e:2x2x1
jax: 0.10.0
libtpu: 0.0.40
codegen_flags: <defaults>
</compile_context>

<pallas_src>
import math

import jax
import jax.numpy as jnp
from jax.experimental import pallas as pl
from jax.experimental.pallas import tpu as pltpu

# ---------------- model hyper-parameters (small, synthetic) -----------------
VOCAB = 1000
MAX_LEN = 8          # sequence length
WIDTH = 32           # transformer width d_model
HEADS = 4
HEAD_DIM = WIDTH // HEADS
MLP = 4 * WIDTH
N_LAYERS = 3         # total resblocks in the synthetic model
LAYER_IDX = 1        # 'penultimate' -> run N_LAYERS - 1 blocks
N_ACTIVE = N_LAYERS - LAYER_IDX
EPS = 1e-5           # nn.LayerNorm default eps


# ------------------------------ Pallas kernel --------------------------------
def _layernorm(x, g, b):
    mu = jnp.mean(x, axis=-1, keepdims=True)
    xc = x - mu                                   # centered once, reused
    var = jnp.mean(xc * xc, axis=-1, keepdims=True)
    return xc * (jax.lax.rsqrt(var + EPS) * g) + b


def encoder_kernel(x_ref, bias_ref, hmask_ref,
                   ln1g_ref, ln1b_ref, wqkv_ref, bqkv_ref, wo_ref, bo_ref,
                   ln2g_ref, ln2b_ref, wfc_ref, bfc_ref, wpr_ref, bpr_ref,
                   lnfg_ref, lnfb_ref, o_ref):
    """Fully fused pre-LN encoder: all resblocks + final LN in one invocation."""
    BL, D = x_ref.shape                 # B*L rows, d_model columns
    H = hmask_ref.shape[0]              # number of heads
    n_blocks = wqkv_ref.shape[0]        # active resblocks (static)

    x = x_ref[...]                      # (BL, D) -- stays on-chip the whole pass
    attn_bias = bias_ref[...]           # (H*BL, BL) causal + batch-block + head-tiled
    hm3 = hmask_ref[...].reshape(H, 1, D)   # head-selection mask, hoisted out of loop

    for i in range(n_blocks):           # static unroll over resblocks
        # ---- attention branch ------------------------------------------------
        h = _layernorm(x, ln1g_ref[i], ln1b_ref[i])
        # Q columns of w_qkv / b_qkv are pre-scaled by 1/sqrt(HEAD_DIM).
        qkv = jnp.dot(h, wqkv_ref[i], preferred_element_type=jnp.float32) + bqkv_ref[i]
        q = qkv[:, 0 * D:1 * D]
        k = qkv[:, 1 * D:2 * D]
        v = qkv[:, 2 * D:3 * D]

        # Head handling WITHOUT per-head slice/concat relayout:
        # stack head-masked copies of q along the row axis -> one NT matmul
        # (M = H*BL = 64) produces per-head scores; cross-head terms vanish
        # because the off-head q columns are zeroed.
        qs = (q.reshape(1, BL, D) * hm3).reshape(H * BL, D)            # (H*BL, D)
        s = jax.lax.dot_general(qs, k, (((1,), (1,)), ((), ())),
                                preferred_element_type=jnp.float32)     # (H*BL, BL)
        s = s + attn_bias               # causal + cross-batch blocking, per head
        s = s - jnp.max(s, axis=-1, keepdims=True)
        p = jnp.exp(s)
        p = p * pl.reciprocal(jnp.sum(p, axis=-1, keepdims=True), approx=True)

        # P @ V in one matmul; then keep only each head's own output columns.
        pv = jnp.dot(p, v, preferred_element_type=jnp.float32)          # (H*BL, D)
        attn = jnp.sum(pv.reshape(H, BL, D) * hm3, axis=0)              # (BL, D)

        x = x + jnp.dot(attn, wo_ref[i], preferred_element_type=jnp.float32) + bo_ref[i]

        # ---- MLP branch --------------------------------------------------------
        h2 = _layernorm(x, ln2g_ref[i], ln2b_ref[i])
        h2 = jnp.dot(h2, wfc_ref[i], preferred_element_type=jnp.float32) + bfc_ref[i]
        h2 = jax.nn.gelu(h2, approximate=True)      # tanh form -> EUP slot
        x = x + jnp.dot(h2, wpr_ref[i], preferred_element_type=jnp.float32) + bpr_ref[i]

    o_ref[...] = _layernorm(x, lnfg_ref[...], lnfb_ref[...])


# ------------------------------ wrappers --------------------------------------
def prepare_params(params):
    """One-time parameter transform (apply exactly ONCE):
      * stack the ACTIVE blocks' weights along a leading layer axis so the whole
        model rides into VMEM for the single fused kernel,
      * fold the 1/sqrt(HEAD_DIM) attention scale into the Q columns of
        w_qkv / b_qkv."""
    blocks = params["blocks"][:N_ACTIVE]
    stack = lambda name: jnp.stack([blk[name] for blk in blocks], axis=0)
    scale = 1.0 / math.sqrt(HEAD_DIM)
    w_qkv = stack("w_qkv").at[:, :, :WIDTH].multiply(scale)
    b_qkv = stack("b_qkv").at[:, :, :WIDTH].multiply(scale)
    return dict(
        token_embedding=params["token_embedding"],
        positional_embedding=params["positional_embedding"],
        attn_mask=params["attn_mask"],
        ln1_g=stack("ln1_g"), ln1_b=stack("ln1_b"),
        w_qkv=w_qkv, b_qkv=b_qkv,
        w_o=stack("w_o"), b_o=stack("b_o"),
        ln2_g=stack("ln2_g"), ln2_b=stack("ln2_b"),
        w_fc=stack("w_fc"), b_fc=stack("b_fc"),
        w_pr=stack("w_pr"), b_pr=stack("b_pr"),
        lnf_g=params["lnf_g"], lnf_b=params["lnf_b"],
    )


@jax.jit
def encoder_forward(tokens, prep):
    """Embedding gather (plain-JAX glue) + one fused Pallas kernel for the stack."""
    B, L = tokens.shape
    D = WIDTH
    x = prep["token_embedding"][tokens] + prep["positional_embedding"]   # (B, L, D)
    x2d = x.reshape(B * L, D)

    # Additive attention bias, built ONCE outside the kernel:
    #   (H*B*L, B*L); causal within a batch element, -1e9 across batch elements,
    #   replicated over heads (row block h covers rows [h*B*L, (h+1)*B*L)).
    causal = prep["attn_mask"]                                           # (L, L)
    same_batch = jnp.kron(jnp.eye(B, dtype=jnp.float32),
                          jnp.ones((L, L), jnp.float32))                 # (BL, BL)
    bias_bl = jnp.where(same_batch > 0.0, jnp.tile(causal, (B, B)),
                        jnp.float32(-1e9))                               # (BL, BL)
    attn_bias = jnp.tile(bias_bl, (HEADS, 1))                            # (H*BL, BL)

    # Head-selection mask (H, D): 1 where column c belongs to head h.
    head_mask = (jnp.arange(D, dtype=jnp.int32)[None, :] // HEAD_DIM ==
                 jnp.arange(HEADS, dtype=jnp.int32)[:, None]).astype(jnp.float32)

    out = pl.pallas_call(
        encoder_kernel,
        out_shape=jax.ShapeDtypeStruct((B * L, D), jnp.float32),
        # Empty grid => single kernel step; every operand is a whole-array VMEM
        # block, so weights load once and activations never touch HBM between
        # layers.  See TODOs at the top for production-shape grid/streaming.
        compiler_params=pltpu.CompilerParams(vmem_limit_bytes=32 * 1024 * 1024),
    )(x2d, attn_bias, head_mask,
      prep["ln1_g"], prep["ln1_b"], prep["w_qkv"], prep["b_qkv"],
      prep["w_o"], prep["b_o"], prep["ln2_g"], prep["ln2_b"],
      prep["w_fc"], prep["b_fc"], prep["w_pr"], prep["b_pr"],
      prep["lnf_g"], prep["lnf_b"])
    return out.reshape(B, L, D)


# ------------------------- deterministic parameter init -----------------------
def init_params(key):
    ks = jax.random.split(key, 4 + N_LAYERS)

    def nrm(k, shape, scale=0.02):
        return (scale * jax.random.normal(k, shape)).astype(jnp.float32)

    blocks = []
    for i in range(N_LAYERS):
        bk = jax.random.split(ks[4 + i], 12)
        blocks.append(dict(
            ln1_g=(1.0 + nrm(bk[8], (1, WIDTH))),
            ln1_b=nrm(bk[9], (1, WIDTH)),
            # weights stored already transposed: y = x @ W + b
            w_qkv=nrm(bk[0], (WIDTH, 3 * WIDTH)),
            b_qkv=nrm(bk[1], (1, 3 * WIDTH)),
            w_o=nrm(bk[2], (WIDTH, WIDTH)),
            b_o=nrm(bk[3], (1, WIDTH)),
            ln2_g=(1.0 + nrm(bk[10], (1, WIDTH))),
            ln2_b=nrm(bk[11], (1, WIDTH)),
            w_fc=nrm(bk[4], (WIDTH, MLP)),
            b_fc=nrm(bk[5], (1, MLP)),
            w_pr=nrm(bk[6], (MLP, WIDTH)),
            b_pr=nrm(bk[7], (1, WIDTH)),
        ))

    # causal additive mask: 0 on/below diagonal, -1e9 above
    mask = jnp.triu(jnp.full((MAX_LEN, MAX_LEN), -1e9, jnp.float32), k=1)
    lk = jax.random.split(ks[2], 2)
    return dict(
        token_embedding=nrm(ks[0], (VOCAB, WIDTH)),
        positional_embedding=nrm(ks[1], (MAX_LEN, WIDTH), 0.01),
        lnf_g=(1.0 + nrm(lk[0], (1, WIDTH))),
        lnf_b=nrm(lk[1], (1, WIDTH)),
        attn_mask=mask,
        blocks=blocks,
    )


# ------------------------------ pure-JAX reference -----------------------------
def _ref_ln(x, g, b):
    mu = jnp.mean(x, -1, keepdims=True)
    var = jnp.mean((x - mu) ** 2, -1, keepdims=True)
    return (x - mu) * jax.lax.rsqrt(var + EPS) * g + b


def reference(tokens, params):
    x = params["token_embedding"][tokens] + params["positional_embedding"]
    mask = params["attn_mask"]
    B, L, D = x.shape
    for i in range(N_ACTIVE):
        p = params["blocks"][i]
        h = _ref_ln(x, p["ln1_g"][0], p["ln1_b"][0])
        qkv = h @ p["w_qkv"] + p["b_qkv"][0]
        q, k, v = jnp.split(qkv, 3, axis=-1)

        def sh(t):
            return t.reshape(B, L, HEADS, HEAD_DIM).transpose(0, 2, 1, 3)

        qh, kh, vh = sh(q), sh(k), sh(v)
        s = jnp.einsum("bhqd,bhkd->bhqk", qh * (1.0 / math.sqrt(HEAD_DIM)), kh) + mask
        a = jax.nn.softmax(s, axis=-1)
        o = jnp.einsum("bhqk,bhkd->bhqd", a, vh).transpose(0, 2, 1, 3).reshape(B, L, D)
        x = x + (o @ p["w_o"] + p["b_o"][0])
        h2 = _ref_ln(x, p["ln2_g"][0], p["ln2_b"][0])
        h2 = jax.nn.gelu(h2 @ p["w_fc"] + p["b_fc"][0], approximate=False)
        x = x + (h2 @ p["w_pr"] + p["b_pr"][0])
    return _ref_ln(x, params["lnf_g"][0], params["lnf_b"][0])


# ----------------------------------- main --------------------------------------
if __name__ == "__main__":
    key = jax.random.PRNGKey(0)
    params = init_params(key)
    prep = prepare_params(params)      # one-time transform, outside the hot path

    tok_key = jax.random.fold_in(key, 123)
    tokens = jax.random.randint(tok_key, (2, MAX_LEN), 0, VOCAB, dtype=jnp.int32)

    out = encoder_forward(tokens, prep)
    out = jax.block_until_ready(out)

    ref = reference(tokens, params)
    assert out.shape == (2, MAX_LEN, WIDTH), out.shape
    max_err = float(jnp.max(jnp.abs(out - ref)))
    # tolerance covers the EUP approximate reciprocal in the softmax denominator
    # and the tanh-form GELU (inputs ~0.1, so the erf/tanh delta is negligible)
    assert max_err < 5e-3, f"mismatch vs reference: max abs err {max_err}"

    print("KERNEL_OK")
</pallas_src>

<mosaic_0001>
module attributes {stable_mosaic.version = 11 : i64} {
  func.func @encoder_kernel(%arg0: memref<16x32xf32, #tpu.memory_space<vmem>>, %arg1: memref<64x16xf32, #tpu.memory_space<vmem>>, %arg2: memref<4x32xf32, #tpu.memory_space<vmem>>, %arg3: memref<2x1x32xf32, #tpu.memory_space<vmem>>, %arg4: memref<2x1x32xf32, #tpu.memory_space<vmem>>, %arg5: memref<2x32x96xf32, #tpu.memory_space<vmem>>, %arg6: memref<2x1x96xf32, #tpu.memory_space<vmem>>, %arg7: memref<2x32x32xf32, #tpu.memory_space<vmem>>, %arg8: memref<2x1x32xf32, #tpu.memory_space<vmem>>, %arg9: memref<2x1x32xf32, #tpu.memory_space<vmem>>, %arg10: memref<2x1x32xf32, #tpu.memory_space<vmem>>, %arg11: memref<2x32x128xf32, #tpu.memory_space<vmem>>, %arg12: memref<2x1x128xf32, #tpu.memory_space<vmem>>, %arg13: memref<2x128x32xf32, #tpu.memory_space<vmem>>, %arg14: memref<2x1x32xf32, #tpu.memory_space<vmem>>, %arg15: memref<1x32xf32, #tpu.memory_space<vmem>>, %arg16: memref<1x32xf32, #tpu.memory_space<vmem>>, %arg17: memref<16x32xf32, #tpu.memory_space<vmem>>) attributes {dimension_semantics = [], scalar_prefetch = 0 : i64, scratch_operands = 0 : i64, tpu.core_type = #tpu.core_type<tc>} {
    %c0 = arith.constant 0 : index
    %c0_0 = arith.constant 0 : index
    %0 = vector.load %arg0[%c0, %c0_0] : memref<16x32xf32, #tpu.memory_space<vmem>>, vector<16x32xf32>
    %c0_1 = arith.constant 0 : index
    %c0_2 = arith.constant 0 : index
    %1 = vector.load %arg1[%c0_1, %c0_2] : memref<64x16xf32, #tpu.memory_space<vmem>>, vector<64x16xf32>
    %c0_3 = arith.constant 0 : index
    %c0_4 = arith.constant 0 : index
    %2 = vector.load %arg2[%c0_3, %c0_4] : memref<4x32xf32, #tpu.memory_space<vmem>>, vector<4x32xf32>
    %3 = vector.shape_cast %2 : vector<4x32xf32> to vector<4x1x32xf32>
    %c0_5 = arith.constant 0 : index
    %c0_6 = arith.constant 0 : index
    %c0_7 = arith.constant 0 : index
    %4 = vector.load %arg3[%c0_5, %c0_6, %c0_7] : memref<2x1x32xf32, #tpu.memory_space<vmem>>, vector<1x1x32xf32>
    %5 = vector.shape_cast %4 : vector<1x1x32xf32> to vector<1x32xf32>
    %c0_8 = arith.constant 0 : index
    %c0_9 = arith.constant 0 : index
    %c0_10 = arith.constant 0 : index
    %6 = vector.load %arg4[%c0_8, %c0_9, %c0_10] : memref<2x1x32xf32, #tpu.memory_space<vmem>>, vector<1x1x32xf32>
    %7 = vector.shape_cast %6 : vector<1x1x32xf32> to vector<1x32xf32>
    %cst = arith.constant dense<0.000000e+00> : vector<16xf32>
    %8 = vector.multi_reduction <add>, %0, %cst [1] : vector<16x32xf32> to vector<16xf32>
    %9 = vector.shape_cast %8 : vector<16xf32> to vector<16x1xf32>
    %cst_11 = arith.constant 3.200000e+01 : f32
    %10 = vector.broadcast %cst_11 : f32 to vector<16x1xf32>
    %11 = arith.divf %9, %10 : vector<16x1xf32>
    %12 = vector.broadcast %11 : vector<16x1xf32> to vector<16x32xf32>
    %13 = arith.subf %0, %12 : vector<16x32xf32>
    %14 = arith.mulf %13, %13 : vector<16x32xf32>
    %cst_12 = arith.constant dense<0.000000e+00> : vector<16xf32>
    %15 = vector.multi_reduction <add>, %14, %cst_12 [1] : vector<16x32xf32> to vector<16xf32>
    %16 = vector.shape_cast %15 : vector<16xf32> to vector<16x1xf32>
    %cst_13 = arith.constant 3.200000e+01 : f32
    %17 = vector.broadcast %cst_13 : f32 to vector<16x1xf32>
    %18 = arith.divf %16, %17 : vector<16x1xf32>
    %cst_14 = arith.constant 9.99999974E-6 : f32
    %19 = vector.broadcast %cst_14 : f32 to vector<16x1xf32>
    %20 = arith.addf %18, %19 : vector<16x1xf32>
    %21 = math.rsqrt %20 : vector<16x1xf32>
    %22 = vector.broadcast %21 : vector<16x1xf32> to vector<16x32xf32>
    %23 = vector.broadcast %5 : vector<1x32xf32> to vector<16x32xf32>
    %24 = arith.mulf %22, %23 : vector<16x32xf32>
    %25 = arith.mulf %13, %24 : vector<16x32xf32>
    %26 = vector.broadcast %7 : vector<1x32xf32> to vector<16x32xf32>
    %27 = arith.addf %25, %26 : vector<16x32xf32>
    %c0_15 = arith.constant 0 : index
    %c0_16 = arith.constant 0 : index
    %c0_17 = arith.constant 0 : index
    %28 = vector.load %arg5[%c0_15, %c0_16, %c0_17] : memref<2x32x96xf32, #tpu.memory_space<vmem>>, vector<1x32x96xf32>
    %29 = vector.shape_cast %28 : vector<1x32x96xf32> to vector<32x96xf32>
    %cst_18 = arith.constant dense<0.000000e+00> : vector<16x96xf32>
    %30 = tpu.matmul %27, %29, %cst_18 {dimension_numbers = #tpu.dot_dimension_numbers<[1], [0], [0], [1], [0, 0, 1, 1], [], []>} : vector<16x32xf32>, vector<32x96xf32>, vector<16x96xf32> -> vector<16x96xf32>
    %c0_19 = arith.constant 0 : index
    %c0_20 = arith.constant 0 : index
    %c0_21 = arith.constant 0 : index
    %31 = vector.load %arg6[%c0_19, %c0_20, %c0_21] : memref<2x1x96xf32, #tpu.memory_space<vmem>>, vector<1x1x96xf32>
    %32 = vector.shape_cast %31 : vector<1x1x96xf32> to vector<1x96xf32>
    %33 = vector.broadcast %32 : vector<1x96xf32> to vector<16x96xf32>
    %34 = arith.addf %30, %33 : vector<16x96xf32>
    %35 = vector.extract_strided_slice %34 {offsets = [0, 0], sizes = [16, 32], strides = [1, 1]} : vector<16x96xf32> to vector<16x32xf32>
    %36 = vector.extract_strided_slice %34 {offsets = [0, 32], sizes = [16, 32], strides = [1, 1]} : vector<16x96xf32> to vector<16x32xf32>
    %37 = vector.extract_strided_slice %34 {offsets = [0, 64], sizes = [16, 32], strides = [1, 1]} : vector<16x96xf32> to vector<16x32xf32>
    %38 = vector.shape_cast %35 : vector<16x32xf32> to vector<1x16x32xf32>
    %39 = vector.broadcast %38 : vector<1x16x32xf32> to vector<4x16x32xf32>
    %40 = vector.broadcast %3 : vector<4x1x32xf32> to vector<4x16x32xf32>
    %41 = arith.mulf %39, %40 : vector<4x16x32xf32>
    %42 = vector.shape_cast %41 : vector<4x16x32xf32> to vector<64x32xf32>
    %cst_22 = arith.constant dense<0.000000e+00> : vector<64x16xf32>
    %43 = tpu.matmul %42, %36, %cst_22 {dimension_numbers = #tpu.dot_dimension_numbers<[1], [1], [0], [0], [0, 0, 1, 0], [], []>} : vector<64x32xf32>, vector<16x32xf32>, vector<64x16xf32> -> vector<64x16xf32>
    %44 = arith.addf %43, %1 : vector<64x16xf32>
    %cst_23 = arith.constant dense<0xFF800000> : vector<64xf32>
    %45 = vector.multi_reduction <maximumf>, %44, %cst_23 [1] : vector<64x16xf32> to vector<64xf32>
    %46 = vector.shape_cast %45 : vector<64xf32> to vector<64x1xf32>
    %47 = vector.broadcast %46 : vector<64x1xf32> to vector<64x16xf32>
    %48 = arith.subf %44, %47 : vector<64x16xf32>
    %49 = math.exp %48 : vector<64x16xf32>
    %cst_24 = arith.constant dense<0.000000e+00> : vector<64xf32>
    %50 = vector.multi_reduction <add>, %49, %cst_24 [1] : vector<64x16xf32> to vector<64xf32>
    %51 = vector.shape_cast %50 : vector<64xf32> to vector<64x1xf32>
    %52 = tpu.reciprocal %51 {approx = true} : vector<64x1xf32> -> vector<64x1xf32>
    %53 = vector.broadcast %52 : vector<64x1xf32> to vector<64x16xf32>
    %54 = arith.mulf %49, %53 : vector<64x16xf32>
    %cst_25 = arith.constant dense<0.000000e+00> : vector<64x32xf32>
    %55 = tpu.matmul %54, %37, %cst_25 {dimension_numbers = #tpu.dot_dimension_numbers<[1], [0], [0], [1], [0, 0, 1, 1], [], []>} : vector<64x16xf32>, vector<16x32xf32>, vector<64x32xf32> -> vector<64x32xf32>
    %56 = vector.shape_cast %55 : vector<64x32xf32> to vector<4x16x32xf32>
    %57 = vector.broadcast %3 : vector<4x1x32xf32> to vector<4x16x32xf32>
    %58 = arith.mulf %56, %57 : vector<4x16x32xf32>
    %cst_26 = arith.constant dense<0.000000e+00> : vector<16x32xf32>
    %59 = vector.multi_reduction <add>, %58, %cst_26 [0] : vector<4x16x32xf32> to vector<16x32xf32>
    %c0_27 = arith.constant 0 : index
    %c0_28 = arith.constant 0 : index
    %c0_29 = arith.constant 0 : index
    %60 = vector.load %arg7[%c0_27, %c0_28, %c0_29] : memref<2x32x32xf32, #tpu.memory_space<vmem>>, vector<1x32x32xf32>
    %61 = vector.shape_cast %60 : vector<1x32x32xf32> to vector<32x32xf32>
    %cst_30 = arith.constant dense<0.000000e+00> : vector<16x32xf32>
    %62 = tpu.matmul %59, %61, %cst_30 {dimension_numbers = #tpu.dot_dimension_numbers<[1], [0], [0], [1], [0, 0, 1, 1], [], []>} : vector<16x32xf32>, vector<32x32xf32>, vector<16x32xf32> -> vector<16x32xf32>
    %63 = arith.addf %0, %62 : vector<16x32xf32>
    %c0_31 = arith.constant 0 : index
    %c0_32 = arith.constant 0 : index
    %c0_33 = arith.constant 0 : index
    %64 = vector.load %arg8[%c0_31, %c0_32, %c0_33] : memref<2x1x32xf32, #tpu.memory_space<vmem>>, vector<1x1x32xf32>
    %65 = vector.shape_cast %64 : vector<1x1x32xf32> to vector<1x32xf32>
    %66 = vector.broadcast %65 : vector<1x32xf32> to vector<16x32xf32>
    %67 = arith.addf %63, %66 : vector<16x32xf32>
    %c0_34 = arith.constant 0 : index
    %c0_35 = arith.constant 0 : index
    %c0_36 = arith.constant 0 : index
    %68 = vector.load %arg9[%c0_34, %c0_35, %c0_36] : memref<2x1x32xf32, #tpu.memory_space<vmem>>, vector<1x1x32xf32>
    %69 = vector.shape_cast %68 : vector<1x1x32xf32> to vector<1x32xf32>
    %c0_37 = arith.constant 0 : index
    %c0_38 = arith.constant 0 : index
    %c0_39 = arith.constant 0 : index
    %70 = vector.load %arg10[%c0_37, %c0_38, %c0_39] : memref<2x1x32xf32, #tpu.memory_space<vmem>>, vector<1x1x32xf32>
    %71 = vector.shape_cast %70 : vector<1x1x32xf32> to vector<1x32xf32>
    %cst_40 = arith.constant dense<0.000000e+00> : vector<16xf32>
    %72 = vector.multi_reduction <add>, %67, %cst_40 [1] : vector<16x32xf32> to vector<16xf32>
    %73 = vector.shape_cast %72 : vector<16xf32> to vector<16x1xf32>
    %cst_41 = arith.constant 3.200000e+01 : f32
    %74 = vector.broadcast %cst_41 : f32 to vector<16x1xf32>
    %75 = arith.divf %73, %74 : vector<16x1xf32>
    %76 = vector.broadcast %75 : vector<16x1xf32> to vector<16x32xf32>
    %77 = arith.subf %67, %76 : vector<16x32xf32>
    %78 = arith.mulf %77, %77 : vector<16x32xf32>
    %cst_42 = arith.constant dense<0.000000e+00> : vector<16xf32>
    %79 = vector.multi_reduction <add>, %78, %cst_42 [1] : vector<16x32xf32> to vector<16xf32>
    %80 = vector.shape_cast %79 : vector<16xf32> to vector<16x1xf32>
    %cst_43 = arith.constant 3.200000e+01 : f32
    %81 = vector.broadcast %cst_43 : f32 to vector<16x1xf32>
    %82 = arith.divf %80, %81 : vector<16x1xf32>
    %cst_44 = arith.constant 9.99999974E-6 : f32
    %83 = vector.broadcast %cst_44 : f32 to vector<16x1xf32>
    %84 = arith.addf %82, %83 : vector<16x1xf32>
    %85 = math.rsqrt %84 : vector<16x1xf32>
    %86 = vector.broadcast %85 : vector<16x1xf32> to vector<16x32xf32>
    %87 = vector.broadcast %69 : vector<1x32xf32> to vector<16x32xf32>
    %88 = arith.mulf %86, %87 : vector<16x32xf32>
    %89 = arith.mulf %77, %88 : vector<16x32xf32>
    %90 = vector.broadcast %71 : vector<1x32xf32> to vector<16x32xf32>
    %91 = arith.addf %89, %90 : vector<16x32xf32>
    %c0_45 = arith.constant 0 : index
    %c0_46 = arith.constant 0 : index
    %c0_47 = arith.constant 0 : index
    %92 = vector.load %arg11[%c0_45, %c0_46, %c0_47] : memref<2x32x128xf32, #tpu.memory_space<vmem>>, vector<1x32x128xf32>
    %93 = vector.shape_cast %92 : vector<1x32x128xf32> to vector<32x128xf32>
    %cst_48 = arith.constant dense<0.000000e+00> : vector<16x128xf32>
    %94 = tpu.matmul %91, %93, %cst_48 {dimension_numbers = #tpu.dot_dimension_numbers<[1], [0], [0], [1], [0, 0, 1, 1], [], []>} : vector<16x32xf32>, vector<32x128xf32>, vector<16x128xf32> -> vector<16x128xf32>
    %c0_49 = arith.constant 0 : index
    %c0_50 = arith.constant 0 : index
    %c0_51 = arith.constant 0 : index
    %95 = vector.load %arg12[%c0_49, %c0_50, %c0_51] : memref<2x1x128xf32, #tpu.memory_space<vmem>>, vector<1x1x128xf32>
    %96 = vector.shape_cast %95 : vector<1x1x128xf32> to vector<1x128xf32>
    %97 = vector.broadcast %96 : vector<1x128xf32> to vector<16x128xf32>
    %98 = arith.addf %94, %97 : vector<16x128xf32>
    %99 = arith.mulf %98, %98 : vector<16x128xf32>
    %100 = arith.mulf %98, %99 : vector<16x128xf32>
    %cst_52 = arith.constant 4.471500e-02 : f32
    %101 = vector.broadcast %cst_52 : f32 to vector<16x128xf32>
    %102 = arith.mulf %101, %100 : vector<16x128xf32>
    %103 = arith.addf %98, %102 : vector<16x128xf32>
    %cst_53 = arith.constant 0.797884583 : f32
    %104 = vector.broadcast %cst_53 : f32 to vector<16x128xf32>
    %105 = arith.mulf %104, %103 : vector<16x128xf32>
    %106 = math.tanh %105 : vector<16x128xf32>
    %cst_54 = arith.constant 1.000000e+00 : f32
    %107 = vector.broadcast %cst_54 : f32 to vector<16x128xf32>
    %108 = arith.addf %107, %106 : vector<16x128xf32>
    %cst_55 = arith.constant 5.000000e-01 : f32
    %109 = vector.broadcast %cst_55 : f32 to vector<16x128xf32>
    %110 = arith.mulf %109, %108 : vector<16x128xf32>
    %111 = arith.mulf %98, %110 : vector<16x128xf32>
    %c0_56 = arith.constant 0 : index
    %c0_57 = arith.constant 0 : index
    %c0_58 = arith.constant 0 : index
    %112 = vector.load %arg13[%c0_56, %c0_57, %c0_58] : memref<2x128x32xf32, #tpu.memory_space<vmem>>, vector<1x128x32xf32>
    %113 = vector.shape_cast %112 : vector<1x128x32xf32> to vector<128x32xf32>
    %cst_59 = arith.constant dense<0.000000e+00> : vector<16x32xf32>
    %114 = tpu.matmul %111, %113, %cst_59 {dimension_numbers = #tpu.dot_dimension_numbers<[1], [0], [0], [1], [0, 0, 1, 1], [], []>} : vector<16x128xf32>, vector<128x32xf32>, vector<16x32xf32> -> vector<16x32xf32>
    %115 = arith.addf %67, %114 : vector<16x32xf32>
    %c0_60 = arith.constant 0 : index
    %c0_61 = arith.constant 0 : index
    %c0_62 = arith.constant 0 : index
    %116 = vector.load %arg14[%c0_60, %c0_61, %c0_62] : memref<2x1x32xf32, #tpu.memory_space<vmem>>, vector<1x1x32xf32>
    %117 = vector.shape_cast %116 : vector<1x1x32xf32> to vector<1x32xf32>
    %118 = vector.broadcast %117 : vector<1x32xf32> to vector<16x32xf32>
    %119 = arith.addf %115, %118 : vector<16x32xf32>
    %c1 = arith.constant 1 : index
    %c0_63 = arith.constant 0 : index
    %c0_64 = arith.constant 0 : index
    %120 = vector.load %arg3[%c1, %c0_63, %c0_64] : memref<2x1x32xf32, #tpu.memory_space<vmem>>, vector<1x1x32xf32>
    %121 = vector.shape_cast %120 : vector<1x1x32xf32> to vector<1x32xf32>
    %c1_65 = arith.constant 1 : index
    %c0_66 = arith.constant 0 : index
    %c0_67 = arith.constant 0 : index
    %122 = vector.load %arg4[%c1_65, %c0_66, %c0_67] : memref<2x1x32xf32, #tpu.memory_space<vmem>>, vector<1x1x32xf32>
    %123 = vector.shape_cast %122 : vector<1x1x32xf32> to vector<1x32xf32>
    %cst_68 = arith.constant dense<0.000000e+00> : vector<16xf32>
    %124 = vector.multi_reduction <add>, %119, %cst_68 [1] : vector<16x32xf32> to vector<16xf32>
    %125 = vector.shape_cast %124 : vector<16xf32> to vector<16x1xf32>
    %cst_69 = arith.constant 3.200000e+01 : f32
    %126 = vector.broadcast %cst_69 : f32 to vector<16x1xf32>
    %127 = arith.divf %125, %126 : vector<16x1xf32>
    %128 = vector.broadcast %127 : vector<16x1xf32> to vector<16x32xf32>
    %129 = arith.subf %119, %128 : vector<16x32xf32>
    %130 = arith.mulf %129, %129 : vector<16x32xf32>
    %cst_70 = arith.constant dense<0.000000e+00> : vector<16xf32>
    %131 = vector.multi_reduction <add>, %130, %cst_70 [1] : vector<16x32xf32> to vector<16xf32>
    %132 = vector.shape_cast %131 : vector<16xf32> to vector<16x1xf32>
    %cst_71 = arith.constant 3.200000e+01 : f32
    %133 = vector.broadcast %cst_71 : f32 to vector<16x1xf32>
    %134 = arith.divf %132, %133 : vector<16x1xf32>
    %cst_72 = arith.constant 9.99999974E-6 : f32
    %135 = vector.broadcast %cst_72 : f32 to vector<16x1xf32>
    %136 = arith.addf %134, %135 : vector<16x1xf32>
    %137 = math.rsqrt %136 : vector<16x1xf32>
    %138 = vector.broadcast %137 : vector<16x1xf32> to vector<16x32xf32>
    %139 = vector.broadcast %121 : vector<1x32xf32> to vector<16x32xf32>
    %140 = arith.mulf %138, %139 : vector<16x32xf32>
    %141 = arith.mulf %129, %140 : vector<16x32xf32>
    %142 = vector.broadcast %123 : vector<1x32xf32> to vector<16x32xf32>
    %143 = arith.addf %141, %142 : vector<16x32xf32>
    %c1_73 = arith.constant 1 : index
    %c0_74 = arith.constant 0 : index
    %c0_75 = arith.constant 0 : index
    %144 = vector.load %arg5[%c1_73, %c0_74, %c0_75] : memref<2x32x96xf32, #tpu.memory_space<vmem>>, vector<1x32x96xf32>
    %145 = vector.shape_cast %144 : vector<1x32x96xf32> to vector<32x96xf32>
    %cst_76 = arith.constant dense<0.000000e+00> : vector<16x96xf32>
    %146 = tpu.matmul %143, %145, %cst_76 {dimension_numbers = #tpu.dot_dimension_numbers<[1], [0], [0], [1], [0, 0, 1, 1], [], []>} : vector<16x32xf32>, vector<32x96xf32>, vector<16x96xf32> -> vector<16x96xf32>
    %c1_77 = arith.constant 1 : index
    %c0_78 = arith.constant 0 : index
    %c0_79 = arith.constant 0 : index
    %147 = vector.load %arg6[%c1_77, %c0_78, %c0_79] : memref<2x1x96xf32, #tpu.memory_space<vmem>>, vector<1x1x96xf32>
    %148 = vector.shape_cast %147 : vector<1x1x96xf32> to vector<1x96xf32>
    %149 = vector.broadcast %148 : vector<1x96xf32> to vector<16x96xf32>
    %150 = arith.addf %146, %149 : vector<16x96xf32>
    %151 = vector.extract_strided_slice %150 {offsets = [0, 0], sizes = [16, 32], strides = [1, 1]} : vector<16x96xf32> to vector<16x32xf32>
    %152 = vector.extract_strided_slice %150 {offsets = [0, 32], sizes = [16, 32], strides = [1, 1]} : vector<16x96xf32> to vector<16x32xf32>
    %153 = vector.extract_strided_slice %150 {offsets = [0, 64], sizes = [16, 32], strides = [1, 1]} : vector<16x96xf32> to vector<16x32xf32>
    %154 = vector.shape_cast %151 : vector<16x32xf32> to vector<1x16x32xf32>
    %155 = vector.broadcast %154 : vector<1x16x32xf32> to vector<4x16x32xf32>
    %156 = vector.broadcast %3 : vector<4x1x32xf32> to vector<4x16x32xf32>
    %157 = arith.mulf %155, %156 : vector<4x16x32xf32>
    %158 = vector.shape_cast %157 : vector<4x16x32xf32> to vector<64x32xf32>
    %cst_80 = arith.constant dense<0.000000e+00> : vector<64x16xf32>
    %159 = tpu.matmul %158, %152, %cst_80 {dimension_numbers = #tpu.dot_dimension_numbers<[1], [1], [0], [0], [0, 0, 1, 0], [], []>} : vector<64x32xf32>, vector<16x32xf32>, vector<64x16xf32> -> vector<64x16xf32>
    %160 = arith.addf %159, %1 : vector<64x16xf32>
    %cst_81 = arith.constant dense<0xFF800000> : vector<64xf32>
    %161 = vector.multi_reduction <maximumf>, %160, %cst_81 [1] : vector<64x16xf32> to vector<64xf32>
    %162 = vector.shape_cast %161 : vector<64xf32> to vector<64x1xf32>
    %163 = vector.broadcast %162 : vector<64x1xf32> to vector<64x16xf32>
    %164 = arith.subf %160, %163 : vector<64x16xf32>
    %165 = math.exp %164 : vector<64x16xf32>
    %cst_82 = arith.constant dense<0.000000e+00> : vector<64xf32>
    %166 = vector.multi_reduction <add>, %165, %cst_82 [1] : vector<64x16xf32> to vector<64xf32>
    %167 = vector.shape_cast %166 : vector<64xf32> to vector<64x1xf32>
    %168 = tpu.reciprocal %167 {approx = true} : vector<64x1xf32> -> vector<64x1xf32>
    %169 = vector.broadcast %168 : vector<64x1xf32> to vector<64x16xf32>
    %170 = arith.mulf %165, %169 : vector<64x16xf32>
    %cst_83 = arith.constant dense<0.000000e+00> : vector<64x32xf32>
    %171 = tpu.matmul %170, %153, %cst_83 {dimension_numbers = #tpu.dot_dimension_numbers<[1], [0], [0], [1], [0, 0, 1, 1], [], []>} : vector<64x16xf32>, vector<16x32xf32>, vector<64x32xf32> -> vector<64x32xf32>
    %172 = vector.shape_cast %171 : vector<64x32xf32> to vector<4x16x32xf32>
    %173 = vector.broadcast %3 : vector<4x1x32xf32> to vector<4x16x32xf32>
    %174 = arith.mulf %172, %173 : vector<4x16x32xf32>
    %cst_84 = arith.constant dense<0.000000e+00> : vector<16x32xf32>
    %175 = vector.multi_reduction <add>, %174, %cst_84 [0] : vector<4x16x32xf32> to vector<16x32xf32>
    %c1_85 = arith.constant 1 : index
    %c0_86 = arith.constant 0 : index
    %c0_87 = arith.constant 0 : index
    %176 = vector.load %arg7[%c1_85, %c0_86, %c0_87] : memref<2x32x32xf32, #tpu.memory_space<vmem>>, vector<1x32x32xf32>
    %177 = vector.shape_cast %176 : vector<1x32x32xf32> to vector<32x32xf32>
    %cst_88 = arith.constant dense<0.000000e+00> : vector<16x32xf32>
    %178 = tpu.matmul %175, %177, %cst_88 {dimension_numbers = #tpu.dot_dimension_numbers<[1], [0], [0], [1], [0, 0, 1, 1], [], []>} : vector<16x32xf32>, vector<32x32xf32>, vector<16x32xf32> -> vector<16x32xf32>
    %179 = arith.addf %119, %178 : vector<16x32xf32>
    %c1_89 = arith.constant 1 : index
    %c0_90 = arith.constant 0 : index
    %c0_91 = arith.constant 0 : index
    %180 = vector.load %arg8[%c1_89, %c0_90, %c0_91] : memref<2x1x32xf32, #tpu.memory_space<vmem>>, vector<1x1x32xf32>
    %181 = vector.shape_cast %180 : vector<1x1x32xf32> to vector<1x32xf32>
    %182 = vector.broadcast %181 : vector<1x32xf32> to vector<16x32xf32>
    %183 = arith.addf %179, %182 : vector<16x32xf32>
    %c1_92 = arith.constant 1 : index
    %c0_93 = arith.constant 0 : index
    %c0_94 = arith.constant 0 : index
    %184 = vector.load %arg9[%c1_92, %c0_93, %c0_94] : memref<2x1x32xf32, #tpu.memory_space<vmem>>, vector<1x1x32xf32>
    %185 = vector.shape_cast %184 : vector<1x1x32xf32> to vector<1x32xf32>
    %c1_95 = arith.constant 1 : index
    %c0_96 = arith.constant 0 : index
    %c0_97 = arith.constant 0 : index
    %186 = vector.load %arg10[%c1_95, %c0_96, %c0_97] : memref<2x1x32xf32, #tpu.memory_space<vmem>>, vector<1x1x32xf32>
    %187 = vector.shape_cast %186 : vector<1x1x32xf32> to vector<1x32xf32>
    %cst_98 = arith.constant dense<0.000000e+00> : vector<16xf32>
    %188 = vector.multi_reduction <add>, %183, %cst_98 [1] : vector<16x32xf32> to vector<16xf32>
    %189 = vector.shape_cast %188 : vector<16xf32> to vector<16x1xf32>
    %cst_99 = arith.constant 3.200000e+01 : f32
    %190 = vector.broadcast %cst_99 : f32 to vector<16x1xf32>
    %191 = arith.divf %189, %190 : vector<16x1xf32>
    %192 = vector.broadcast %191 : vector<16x1xf32> to vector<16x32xf32>
    %193 = arith.subf %183, %192 : vector<16x32xf32>
    %194 = arith.mulf %193, %193 : vector<16x32xf32>
    %cst_100 = arith.constant dense<0.000000e+00> : vector<16xf32>
    %195 = vector.multi_reduction <add>, %194, %cst_100 [1] : vector<16x32xf32> to vector<16xf32>
    %196 = vector.shape_cast %195 : vector<16xf32> to vector<16x1xf32>
    %cst_101 = arith.constant 3.200000e+01 : f32
    %197 = vector.broadcast %cst_101 : f32 to vector<16x1xf32>
    %198 = arith.divf %196, %197 : vector<16x1xf32>
    %cst_102 = arith.constant 9.99999974E-6 : f32
    %199 = vector.broadcast %cst_102 : f32 to vector<16x1xf32>
    %200 = arith.addf %198, %199 : vector<16x1xf32>
    %201 = math.rsqrt %200 : vector<16x1xf32>
    %202 = vector.broadcast %201 : vector<16x1xf32> to vector<16x32xf32>
    %203 = vector.broadcast %185 : vector<1x32xf32> to vector<16x32xf32>
    %204 = arith.mulf %202, %203 : vector<16x32xf32>
    %205 = arith.mulf %193, %204 : vector<16x32xf32>
    %206 = vector.broadcast %187 : vector<1x32xf32> to vector<16x32xf32>
    %207 = arith.addf %205, %206 : vector<16x32xf32>
    %c1_103 = arith.constant 1 : index
    %c0_104 = arith.constant 0 : index
    %c0_105 = arith.constant 0 : index
    %208 = vector.load %arg11[%c1_103, %c0_104, %c0_105] : memref<2x32x128xf32, #tpu.memory_space<vmem>>, vector<1x32x128xf32>
    %209 = vector.shape_cast %208 : vector<1x32x128xf32> to vector<32x128xf32>
    %cst_106 = arith.constant dense<0.000000e+00> : vector<16x128xf32>
    %210 = tpu.matmul %207, %209, %cst_106 {dimension_numbers = #tpu.dot_dimension_numbers<[1], [0], [0], [1], [0, 0, 1, 1], [], []>} : vector<16x32xf32>, vector<32x128xf32>, vector<16x128xf32> -> vector<16x128xf32>
    %c1_107 = arith.constant 1 : index
    %c0_108 = arith.constant 0 : index
    %c0_109 = arith.constant 0 : index
    %211 = vector.load %arg12[%c1_107, %c0_108, %c0_109] : memref<2x1x128xf32, #tpu.memory_space<vmem>>, vector<1x1x128xf32>
    %212 = vector.shape_cast %211 : vector<1x1x128xf32> to vector<1x128xf32>
    %213 = vector.broadcast %212 : vector<1x128xf32> to vector<16x128xf32>
    %214 = arith.addf %210, %213 : vector<16x128xf32>
    %215 = arith.mulf %214, %214 : vector<16x128xf32>
    %216 = arith.mulf %214, %215 : vector<16x128xf32>
    %cst_110 = arith.constant 4.471500e-02 : f32
    %217 = vector.broadcast %cst_110 : f32 to vector<16x128xf32>
    %218 = arith.mulf %217, %216 : vector<16x128xf32>
    %219 = arith.addf %214, %218 : vector<16x128xf32>
    %cst_111 = arith.constant 0.797884583 : f32
    %220 = vector.broadcast %cst_111 : f32 to vector<16x128xf32>
    %221 = arith.mulf %220, %219 : vector<16x128xf32>
    %222 = math.tanh %221 : vector<16x128xf32>
    %cst_112 = arith.constant 1.000000e+00 : f32
    %223 = vector.broadcast %cst_112 : f32 to vector<16x128xf32>
    %224 = arith.addf %223, %222 : vector<16x128xf32>
    %cst_113 = arith.constant 5.000000e-01 : f32
    %225 = vector.broadcast %cst_113 : f32 to vector<16x128xf32>
    %226 = arith.mulf %225, %224 : vector<16x128xf32>
    %227 = arith.mulf %214, %226 : vector<16x128xf32>
    %c1_114 = arith.constant 1 : index
    %c0_115 = arith.constant 0 : index
    %c0_116 = arith.constant 0 : index
    %228 = vector.load %arg13[%c1_114, %c0_115, %c0_116] : memref<2x128x32xf32, #tpu.memory_space<vmem>>, vector<1x128x32xf32>
    %229 = vector.shape_cast %228 : vector<1x128x32xf32> to vector<128x32xf32>
    %cst_117 = arith.constant dense<0.000000e+00> : vector<16x32xf32>
    %230 = tpu.matmul %227, %229, %cst_117 {dimension_numbers = #tpu.dot_dimension_numbers<[1], [0], [0], [1], [0, 0, 1, 1], [], []>} : vector<16x128xf32>, vector<128x32xf32>, vector<16x32xf32> -> vector<16x32xf32>
    %231 = arith.addf %183, %230 : vector<16x32xf32>
    %c1_118 = arith.constant 1 : index
    %c0_119 = arith.constant 0 : index
    %c0_120 = arith.constant 0 : index
    %232 = vector.load %arg14[%c1_118, %c0_119, %c0_120] : memref<2x1x32xf32, #tpu.memory_space<vmem>>, vector<1x1x32xf32>
    %233 = vector.shape_cast %232 : vector<1x1x32xf32> to vector<1x32xf32>
    %234 = vector.broadcast %233 : vector<1x32xf32> to vector<16x32xf32>
    %235 = arith.addf %231, %234 : vector<16x32xf32>
    %c0_121 = arith.constant 0 : index
    %c0_122 = arith.constant 0 : index
    %236 = vector.load %arg15[%c0_121, %c0_122] : memref<1x32xf32, #tpu.memory_space<vmem>>, vector<1x32xf32>
    %c0_123 = arith.constant 0 : index
    %c0_124 = arith.constant 0 : index
    %237 = vector.load %arg16[%c0_123, %c0_124] : memref<1x32xf32, #tpu.memory_space<vmem>>, vector<1x32xf32>
    %cst_125 = arith.constant dense<0.000000e+00> : vector<16xf32>
    %238 = vector.multi_reduction <add>, %235, %cst_125 [1] : vector<16x32xf32> to vector<16xf32>
    %239 = vector.shape_cast %238 : vector<16xf32> to vector<16x1xf32>
    %cst_126 = arith.constant 3.200000e+01 : f32
    %240 = vector.broadcast %cst_126 : f32 to vector<16x1xf32>
    %241 = arith.divf %239, %240 : vector<16x1xf32>
    %242 = vector.broadcast %241 : vector<16x1xf32> to vector<16x32xf32>
    %243 = arith.subf %235, %242 : vector<16x32xf32>
    %244 = arith.mulf %243, %243 : vector<16x32xf32>
    %cst_127 = arith.constant dense<0.000000e+00> : vector<16xf32>
    %245 = vector.multi_reduction <add>, %244, %cst_127 [1] : vector<16x32xf32> to vector<16xf32>
    %246 = vector.shape_cast %245 : vector<16xf32> to vector<16x1xf32>
    %cst_128 = arith.constant 3.200000e+01 : f32
    %247 = vector.broadcast %cst_128 : f32 to vector<16x1xf32>
    %248 = arith.divf %246, %247 : vector<16x1xf32>
    %cst_129 = arith.constant 9.99999974E-6 : f32
    %249 = vector.broadcast %cst_129 : f32 to vector<16x1xf32>
    %250 = arith.addf %248, %249 : vector<16x1xf32>
    %251 = math.rsqrt %250 : vector<16x1xf32>
    %252 = vector.broadcast %251 : vector<16x1xf32> to vector<16x32xf32>
    %253 = vector.broadcast %236 : vector<1x32xf32> to vector<16x32xf32>
    %254 = arith.mulf %252, %253 : vector<16x32xf32>
    %255 = arith.mulf %243, %254 : vector<16x32xf32>
    %256 = vector.broadcast %237 : vector<1x32xf32> to vector<16x32xf32>
    %257 = arith.addf %255, %256 : vector<16x32xf32>
    %c0_130 = arith.constant 0 : index
    %c0_131 = arith.constant 0 : index
    %258 = vector.load %arg17[%c0_130, %c0_131] : memref<16x32xf32, #tpu.memory_space<vmem>>, vector<16x32xf32>
    tpu.vector_store %arg17[%c0_130, %c0_131], %257 {strides = array<i32>} : memref<16x32xf32, #tpu.memory_space<vmem>>, vector<16x32xf32>,
    return
  }
}

</mosaic_0001>

<bundles_post_ra>
// kernel: encoder_forward.1
= control target key start
LH: loop header
LB: loop body
LE: loop exit
PB: predicated region body
PF: predicated region fallthrough
CT: control target
= control target key end

     0   :  { %s3113_s0 = inlined_call_operand.vmem [shape: f32[16,32], index: 0, kind: input, shape index: {}]   ;;  %s3114_s1 = inlined_call_operand.vmem [shape: f32[64,16], index: 1, kind: input, shape index: {}]   ;;  %s3115_s2 = inlined_call_operand.vmem [shape: f32[4,32], index: 2, kind: input, shape index: {}]   ;;  %s3116_s3 = inlined_call_operand.vmem [shape: f32[2,1,32], index: 3, kind: input, shape index: {}]   ;;  %s3117_s4 = inlined_call_operand.vmem [shape: f32[2,1,32], index: 4, kind: input, shape index: {}]   ;;  %s3118_s5 = inlined_call_operand.vmem [shape: f32[2,32,96], index: 5, kind: input, shape index: {}]   ;;  %s3119_s6 = inlined_call_operand.vmem [shape: f32[2,1,96], index: 6, kind: input, shape index: {}]   ;;  %s3120_s7 = inlined_call_operand.vmem [shape: f32[2,32,32], index: 7, kind: input, shape index: {}]   ;;  %s3121_s8 = inlined_call_operand.vmem [shape: f32[2,1,32], index: 8, kind: input, shape index: {}]   ;;  %s3122_s9 = inlined_call_operand.vmem [shape: f32[2,1,32], index: 9, kind: input, shape index: {}]   ;;  %s3123_s10 = inlined_call_operand.vmem [shape: f32[2,1,32], index: 10, kind: input, shape index: {}]   ;;  %s3124_s11 = inlined_call_operand.vmem [shape: f32[2,32,128], index: 11, kind: input, shape index: {}]   ;;  %s3125_s12 = inlined_call_operand.vmem [shape: f32[2,1,128], index: 12, kind: input, shape index: {}]   ;;  %s3126_s13 = inlined_call_operand.vmem [shape: f32[2,128,32], index: 13, kind: input, shape index: {}]   ;;  %s3127_s14 = inlined_call_operand.vmem [shape: f32[2,1,32], index: 14, kind: input, shape index: {}]   ;;  %s3128_s15 = inlined_call_operand.vmem [shape: f32[1,32], index: 15, kind: input, shape index: {}]   ;;  %s3129_s16 = inlined_call_operand.vmem [shape: f32[1,32], index: 16, kind: input, shape index: {}]   ;;  %s3130_s17 = inlined_call_operand.hbm [shape: f32[16,32], index: 17, kind: output, shape index: {}]  }
   0x1   :  { %3133 = sst [smem:[#allocation5_spill]] %s3113_s0 }
   0x2   :  { %3134 = sst [smem:[#allocation6_spill]] %s3114_s1 }
   0x3   :  { %s3135_s26 = sld [smem:[#allocation5_spill]]  ;;  %vm95_vm0 = vcmask 261120  }
   0x9   :  { %v2584_v0 = vld [vmem:[%s3135_s26] sm:$0xff]  ;;  %v2589_v1 = vld [vmem:[%s3135_s26 + $0x8] sm:$0xff] }
   0xa   :  { %22 = vsyncpa [#allocation3], 0  ;;  %v96_v2 = vsel %vm95_vm0, %v2584_v0, 0.0  ;;  %v99_v3 = vsel %vm95_vm0, %v2589_v1, 0.0  ;;  %v142_v14 = vld [vmem:[%s3118_s5 + $0x18] sm:$0xff]  ;;  %v141_v15 = vld [vmem:[%s3118_s5 + $0x10] sm:$0xff]  ;;  %v80_v36 = vlaneseq }
   0xb   :  { %97 = vadd.xlane.f32.xlu0 %v96_v2  ;;  %2165 = vmatprep.subr.mxu1 %v142_v14  ;;  %v140_v16 = vld [vmem:[%s3118_s5 + $0x8] sm:$0xff]  ;;  %v139_v17 = vld [vmem:[%s3118_s5] sm:$0xff]  ;;  %v2485_v34 = vmov 1966171168   ;;  %s3136_s18 = sld [smem:[#allocation6_spill]]  ;;  %vm398_vm1 = vcmask 130048  }
   0xc   :  { %2166 = vmatpush3.msra.mxu1 %v142_v14  ;;  %v1951_v24 = vld [vmem:[%s3116_s3] ss:$0 sm:$0xff]  ;;  %v78_v35 = vunpack.c.l.s4 %v2485_v34  ;;  %v81_v38 = vshrl.u32 %v80_v36, 7  ;;  %s2488_s22 = smov [#allocation2]  }
   0xd   :  { %2167 = vmatprep.subr.mxu1 %v141_v15  ;;  %v1952_v27 = vld [vmem:[%s3117_s4] ss:$0 sm:$0xff] }
   0xe   :  { %2168 = vmatpush3.msra.mxu1 %v141_v15  ;;  %v79_v37 = vunpack.c.0.s8 %v78_v35  ;;  %v1950_v39 = vld.sshfl [vmem:[%s3115_s2] sm:$0x33 pattern:$0x75316420]  ;;  %v233_v44 = vsub.s32 0, %v81_v38  ;;  %s2486_s2 = smov 96  }
   0xf   :  { %100 = vadd.xlane.f32.xlu0 %v99_v3  ;;  %2169 = vmatprep.subr.mxu1 %v140_v16  ;;  %v76_v41 = vcombine.high %v1950_v39, %v1950_v39  ;;  %v1953_v50 = vld [vmem:[%s3119_s6] ss:$0 sm:$0xff] }
  0x10   :  { %2170 = vmatpush3.msra.mxu1 %v140_v16  ;;  %v82_v40 = vsub.s32 %v79_v37, %v81_v38 }
  0x11   :  { %2171 = vmatprep.subr.mxu1 %v139_v17 }
  0x12   :  { %2172 = vmatpush3.msra.mxu1 %v139_v17  ;;  %v83_v42 = vrot.slane %v1950_v39, %v82_v40  ;;  %v90_v43 = vrot.slane %v76_v41, %v82_v40  ;;  %v2697_v17 = vld [vmem:[%s3136_s18 + $0x28] sm:$0xff] }
  0x14   :  { %v91_v45 = vcombine.high %v83_v42, %v83_v42  ;;  %v92_v46 = vcombine.high %v90_v43, %v90_v43  ;;  %v2622_v47 = vrot.slane %v90_v43, %v233_v44  ;;  %v2637_v55 = vrot.slane %v83_v42, %v233_v44 }
  0x16   :  { %v2624_v48 = vrot.slane %v91_v45, %v233_v44  ;;  %v2626_v49 = vrot.slane %v92_v46, %v233_v44 }
  0x94   :  { %v98_v4 = vpop.xlane.xlu0 %97 }
  0x95   :  { %v103_v5 = vmul.f32 0.03125, %v98_v4  ;;  %v2672_v4 = vld [vmem:[%s3136_s18 + $0x8] sm:$0xff] }
  0x97   :  { %v105_v6 = vsub.f32 %v2584_v0, %v103_v5 }
  0x98   :  { %v101_v7 = vpop.xlane.xlu0 %100 }
  0x99   :  { %v104_v8 = vmul.f32 0.03125, %v101_v7  ;;  %v107_v9 = vmul.f32 %v105_v6, %v105_v6 }
  0x9b   :  { %v106_v10 = vsub.f32 %v2589_v1, %v104_v8  ;;  %v109_v11 = vsel %vm95_vm0, %v107_v9, 0.0  ;;  %v2683_v9 = vld [vmem:[%s3136_s18 + $0x18] sm:$0xff] }
  0x9c   :  { %110 = vadd.xlane.f32.xlu1 %v109_v11 }
  0x9d   :  { %v108_v12 = vmul.f32 %v106_v10, %v106_v10 }
  0x9f   :  { %v112_v13 = vsel %vm95_vm0, %v108_v12, 0.0 }
  0xa0   :  { %113 = vadd.xlane.f32.xlu1 %v112_v13  ;;  %v2690_v13 = vld [vmem:[%s3136_s18 + $0x10] sm:$0xff] }
 0x125   :  { %v111_v18 = vpop.xlane.xlu1 %110 }
 0x126   :  { %v115_v19 = vmul.f32 0.03125, %v111_v18 }
 0x128   :  { %v117_v20 = vadd.f32 1e-05, %v115_v19 }
 0x129   :  { %v114_v21 = vpop.xlane.xlu1 %113 }
 0x12a   :  { %2371 = vrsqrt.f32 %v117_v20  ;;  %v116_v22 = vmul.f32 0.03125, %v114_v21  ;;  %v2703_v20 = vld [vmem:[%s3136_s18 + $0x20] sm:$0xff] }
 0x12c   :  { %v118_v23 = vadd.f32 1e-05, %v116_v22 }
 0x12e   :  { %2373 = vrsqrt.f32 %v118_v23 }
 0x137   :  { %v2372_v25 = vpop.eup %2371 }
 0x138   :  { %v127_v26 = vmul.f32 %v2372_v25, %v1951_v24  ;;  %v2711_v25 = vld [vmem:[%s3136_s18 + $0x38] sm:$0xff] }
 0x13a   :  { %v129_v28 = vmul.f32 %v127_v26, %v105_v6  ;;  %v2677_v6 = vld [vmem:[%s3136_s18] sm:$0xff] }
 0x13b   :  { %v2374_v29 = vpop.eup %2373 }
 0x13c   :  { %v128_v30 = vmul.f32 %v2374_v29, %v1951_v24  ;;  %v137_v31 = vadd.f32 %v1952_v27, %v129_v28  ;;  %v2717_v28 = vld [vmem:[%s3136_s18 + $0x30] sm:$0xff]  ;;  %s2487_s18 = smov 64  }
 0x13e   :  { %v130_v32 = vmul.f32 %v128_v30, %v106_v10  ;;  %2173 = vmatprep.mubr.msk.f32.mxu1 %vm95_vm0, %v137_v31 }
 0x140   :  { %v138_v33 = vadd.f32 %v1952_v27, %v130_v32 }
 0x142   :  { %2174 = vmatmul.mubr.msk.f32.vlgmr.msra.gmra.mxu1 %vm95_vm0, %v138_v33 }
 0x202   :  { %v2175_v51 = vpop.f32.mrf.mxu1 }
 0x203   :  { %v2631_v52 = vadd.f32 %v2175_v51, %v1953_v50 }
 0x204   :  { %v222_v53 = vpop.f32.mrf.mxu1 }
 0x205   :  { %v2633_v54 = vadd.f32 %v1953_v50, %v222_v53  ;;  %263 = vrot.lane.b32.xlu0 %v2631_v52, %s2486_s2  ;;  %v252_v59 = vmul.f32 %v2637_v55, %v2631_v52  ;;  %v254_v61 = vmul.f32 %v2622_v47, %v2631_v52  ;;  %v256_v63 = vmul.f32 %v2624_v48, %v2631_v52 }
 0x206   :  { %v258_v3 = vmul.f32 %v2626_v49, %v2631_v52 }
 0x207   :  { %261 = vrot.lane.b32.xlu1 %v2633_v54, %s2486_s2  ;;  %v251_v56 = vmul.f32 %v2637_v55, %v2633_v54  ;;  %v253_v60 = vmul.f32 %v2622_v47, %v2633_v54  ;;  %v255_v62 = vmul.f32 %v2624_v48, %v2633_v54  ;;  %v257_v2 = vmul.f32 %v2626_v49, %v2633_v54 }
 0x209   :  { %2180 = vmatprep.mubr.msk.f32.mxu1 %vm95_vm0, %v251_v56 }
 0x277   :  { %v264_v57 = vpop.permute.xlu0 %263 }
 0x278   :  { %2176 = vmatprep.subr.msk.mxu1 %vm95_vm0, %v264_v57 }
 0x279   :  { %2177 = vmatpush3.xpose.msk.msra.mxu1 %vm95_vm0, %v264_v57  ;;  %v262_v58 = vpop.permute.xlu1 %261 }
 0x27a   :  { %2178 = vmatprep.subr.msk.mxu1 %vm95_vm0, %v262_v58 }
 0x27d   :  { %2179 = vmatpush3.xpose.msk.msra.mxu1 %vm95_vm0, %v262_v58 }
 0x280   :  { %2181 = vmatmul.mubr.msk.f32.vlgmr.msra.gmra.mxu1 %vm95_vm0, %v252_v59 }
 0x281   :  { %2183 = vmatprep.mubr.msk.f32.mxu1 %vm95_vm0, %v253_v60 }
 0x284   :  { %2184 = vmatmul.mubr.msk.f32.gmra.mxu1 %vm95_vm0, %v254_v61 }
 0x285   :  { %2186 = vmatprep.mubr.msk.f32.mxu1 %vm95_vm0, %v255_v62 }
 0x288   :  { %2187 = vmatmul.mubr.msk.f32.gmra.mxu1 %vm95_vm0, %v256_v63 }
 0x289   :  { %2189 = vmatprep.mubr.msk.f32.mxu1 %vm95_vm0, %v257_v2 }
 0x28c   :  { %2190 = vmatmul.mubr.msk.f32.gmra.mxu1 %vm95_vm0, %v258_v3 }
 0x340   :  { %v2182_v5 = vpop.f32.mrf.mxu1 }
 0x341   :  { %v365_v7 = vadd.f32 %v2182_v5, %v2672_v4 }
 0x342   :  { %v359_v8 = vpop.f32.mrf.mxu1 }
 0x343   :  { %v360_v10 = vadd.f32 %v359_v8, %v2677_v6  ;;  %v402_v11 = vsel %vm398_vm1, %v365_v7, -inf }
 0x344   :  { %403 = vmax.xlane.f32.xlu0 %v402_v11  ;;  %v2185_v12 = vpop.f32.mrf.mxu1 }
 0x345   :  { %v375_v14 = vadd.f32 %v2185_v12, %v2683_v9  ;;  %v399_v15 = vsel %vm398_vm1, %v360_v10, -inf }
 0x346   :  { %v369_v16 = vpop.f32.mrf.mxu1  ;;  %400 = vmax.xlane.f32.xlu1 %v399_v15 }
 0x347   :  { %v370_v18 = vadd.f32 %v369_v16, %v2690_v13  ;;  %v408_v23 = vsel %vm398_vm1, %v375_v14, -inf }
 0x348   :  { %v2188_v19 = vpop.f32.mrf.mxu1 }
 0x349   :  { %v385_v21 = vadd.f32 %v2188_v19, %v2697_v17  ;;  %v405_v22 = vsel %vm398_vm1, %v370_v18, -inf }
 0x34a   :  { %v379_v24 = vpop.f32.mrf.mxu1  ;;  %406 = vmax.xlane.f32.xlu0 %v405_v22  ;;  %409 = vmax.xlane.f32.xlu1 %v408_v23 }
 0x34b   :  { %v380_v26 = vadd.f32 %v379_v24, %v2703_v20  ;;  %v414_v31 = vsel %vm398_vm1, %v385_v21, -inf }
 0x34c   :  { %v2191_v27 = vpop.f32.mrf.mxu1 }
 0x34d   :  { %v395_v29 = vadd.f32 %v2191_v27, %v2711_v25  ;;  %v411_v30 = vsel %vm398_vm1, %v380_v26, -inf }
 0x34e   :  { %v389_v32 = vpop.f32.mrf.mxu1  ;;  %412 = vmax.xlane.f32.xlu0 %v411_v30  ;;  %415 = vmax.xlane.f32.xlu1 %v414_v31 }
 0x34f   :  { %v390_v33 = vadd.f32 %v389_v32, %v2717_v28  ;;  %v420_v35 = vsel %vm398_vm1, %v395_v29, -inf }
 0x351   :  { %v417_v34 = vsel %vm398_vm1, %v390_v33, -inf }
 0x352   :  { %418 = vmax.xlane.f32.xlu0 %v417_v34  ;;  %421 = vmax.xlane.f32.xlu1 %v420_v35 }
 0x3cd   :  { %v404_v36 = vpop.xlane.xlu0 %403 }
 0x3ce   :  { %v424_v37 = vsub.f32 %v365_v7, %v404_v36 }
 0x3cf   :  { %v401_v38 = vpop.xlane.xlu1 %400 }
 0x3d0   :  { %v433_v39 = vmul.f32 1.442695, %v424_v37  ;;  %v423_v40 = vsub.f32 %v360_v10, %v401_v38 }
 0x3d2   :  { %2375 = vpow2.f32 %v433_v39  ;;  %v431_v41 = vmul.f32 1.442695, %v423_v40 }
 0x3d3   :  { %v407_v42 = vpop.xlane.xlu0 %406  ;;  %v410_v43 = vpop.xlane.xlu1 %409 }
 0x3d4   :  { %2377 = vpow2.f32 %v431_v41  ;;  %v425_v44 = vsub.f32 %v370_v18, %v407_v42  ;;  %v426_v45 = vsub.f32 %v375_v14, %v410_v43 }
 0x3d6   :  { %v435_v46 = vmul.f32 1.442695, %v425_v44  ;;  %v437_v50 = vmul.f32 1.442695, %v426_v45 }
 0x3d7   :  { %v413_v51 = vpop.xlane.xlu0 %412  ;;  %v416_v53 = vpop.xlane.xlu1 %415 }
 0x3d8   :  { %2379 = vpow2.f32 %v435_v46  ;;  %v427_v56 = vsub.f32 %v380_v26, %v413_v51  ;;  %v428_v57 = vsub.f32 %v385_v21, %v416_v53 }
 0x3d9   :  { %2381 = vpow2.f32 %v437_v50 }
 0x3da   :  { %v439_v58 = vmul.f32 1.442695, %v427_v56  ;;  %v441_v59 = vmul.f32 1.442695, %v428_v57 }
 0x3db   :  { %v419_v60 = vpop.xlane.xlu0 %418  ;;  %v422_v61 = vpop.xlane.xlu1 %421 }
 0x3dc   :  { %2383 = vpow2.f32 %v439_v58  ;;  %v429_v62 = vsub.f32 %v390_v33, %v419_v60  ;;  %v430_v63 = vsub.f32 %v395_v29, %v422_v61  ;;  %v647_v58 = vld [vmem:[%s3120_s7 + $0x18] sm:$0xff]  ;;  %v645_v60 = vld [vmem:[%s3120_s7 + $0x8] sm:$0xff]  ;;  %v644_v61 = vld [vmem:[%s3120_s7] sm:$0xff] }
 0x3dd   :  { %2385 = vpow2.f32 %v441_v59  ;;  %2208 = vmatprep.subr.mxu1 %v647_v58  ;;  %v646_v59 = vld [vmem:[%s3120_s7 + $0x10] sm:$0xff] }
 0x3de   :  { %v443_v2 = vmul.f32 1.442695, %v429_v62  ;;  %v445_v3 = vmul.f32 1.442695, %v430_v63  ;;  %2209 = vmatpush3.msra.mxu1 %v647_v58 }
 0x3df   :  { %v2376_v5 = vpop.eup %2375  ;;  %2210 = vmatprep.subr.mxu1 %v646_v59 }
 0x3e0   :  { %2387 = vpow2.f32 %v443_v2  ;;  %v450_v7 = vsel %vm398_vm1, %v2376_v5, 0.0  ;;  %2211 = vmatpush3.msra.mxu1 %v646_v59  ;;  %v787_v59 = vld [vmem:[%s3124_s11 + $0x18] sm:$0xff] }
 0x3e1   :  { %v2378_v8 = vpop.eup %2377  ;;  %2389 = vpow2.f32 %v445_v3  ;;  %451 = vadd.xlane.f32.xlu1 %v450_v7  ;;  %2212 = vmatprep.subr.mxu1 %v645_v60 }
 0x3e2   :  { %v447_v10 = vsel %vm398_vm1, %v2378_v8, 0.0  ;;  %2213 = vmatpush3.msra.mxu1 %v645_v60  ;;  %v786_v60 = vld [vmem:[%s3124_s11 + $0x10] sm:$0xff] }
 0x3e3   :  { %448 = vadd.xlane.f32.xlu0 %v447_v10  ;;  %2214 = vmatprep.subr.mxu1 %v644_v61 }
 0x3e4   :  { %2215 = vmatpush3.msra.mxu1 %v644_v61  ;;  %v785_v61 = vld [vmem:[%s3124_s11 + $0x8] sm:$0xff] }
 0x3e5   :  { %v2380_v11 = vpop.eup %2379 }
 0x3e6   :  { %v2382_v12 = vpop.eup %2381  ;;  %v453_v14 = vsel %vm398_vm1, %v2380_v11, 0.0 }
 0x3e7   :  { %454 = vadd.xlane.f32.xlu0 %v453_v14  ;;  %v456_v15 = vsel %vm398_vm1, %v2382_v12, 0.0 }
 0x3e8   :  { %457 = vadd.xlane.f32.xlu1 %v456_v15 }
 0x3e9   :  { %v2384_v16 = vpop.eup %2383 }
 0x3ea   :  { %v2386_v18 = vpop.eup %2385  ;;  %v459_v19 = vsel %vm398_vm1, %v2384_v16, 0.0 }
 0x3eb   :  { %460 = vadd.xlane.f32.xlu0 %v459_v19  ;;  %v462_v21 = vsel %vm398_vm1, %v2386_v18, 0.0 }
 0x3ec   :  { %463 = vadd.xlane.f32.xlu1 %v462_v21 }
 0x3ed   :  { %v2388_v22 = vpop.eup %2387 }
 0x3ee   :  { %v2390_v23 = vpop.eup %2389  ;;  %v465_v24 = vsel %vm398_vm1, %v2388_v22, 0.0 }
 0x3ef   :  { %466 = vadd.xlane.f32.xlu0 %v465_v24  ;;  %v468_v26 = vsel %vm398_vm1, %v2390_v23, 0.0 }
 0x3f0   :  { %469 = vadd.xlane.f32.xlu1 %v468_v26 }
 0x401   :  { %487 = vrot.lane.b32.xlu1 %v2633_v54, %s2487_s18 }
 0x405   :  { %489 = vrot.lane.b32.xlu0 %v2631_v52, %s2487_s18 }
 0x46a   :  { %v452_v27 = vpop.xlane.xlu1 %451 }
 0x46c   :  { %v449_v29 = vpop.xlane.xlu0 %448 }
 0x46d   :  { %2391 = vrcp.f32 %v449_v29 }
 0x46e   :  { %2393 = vrcp.f32 %v452_v27 }
 0x470   :  { %v455_v30 = vpop.xlane.xlu0 %454 }
 0x471   :  { %2395 = vrcp.f32 %v455_v30  ;;  %v458_v31 = vpop.xlane.xlu1 %457 }
 0x472   :  { %2397 = vrcp.f32 %v458_v31 }
 0x474   :  { %v461_v32 = vpop.xlane.xlu0 %460 }
 0x475   :  { %2399 = vrcp.f32 %v461_v32  ;;  %v464_v33 = vpop.xlane.xlu1 %463 }
 0x476   :  { %2401 = vrcp.f32 %v464_v33 }
 0x478   :  { %v467_v34 = vpop.xlane.xlu0 %466 }
 0x479   :  { %2403 = vrcp.f32 %v467_v34  ;;  %v470_v35 = vpop.xlane.xlu1 %469 }
 0x47a   :  { %v2392_v36 = vpop.eup %2391  ;;  %2405 = vrcp.f32 %v470_v35 }
 0x47b   :  { %v479_v54 = vmul.f32 %v2392_v36, %v2378_v8  ;;  %v2394_v37 = vpop.eup %2393 }
 0x47c   :  { %v490_v52 = vpop.permute.xlu0 %489  ;;  %v480_v40 = vmul.f32 %v2394_v37, %v2376_v5 }
 0x47d   :  { %2192 = vmatprep.subr.mxu0 %v490_v52  ;;  %2196 = vmatprep.mubr.msk.f32.mxu0 %vm398_vm1, %v479_v54  ;;  %v488_v39 = vpop.permute.xlu1 %487 }
 0x47e   :  { %v2396_v38 = vpop.eup %2395  ;;  %2193 = vmatpush3.msra.mxu0 %v490_v52  ;;  %v1976_v52 = vld [vmem:[%s3121_s8] ss:$0 sm:$0xff] }
 0x47f   :  { %2194 = vmatprep.subr.mxu0 %v488_v39  ;;  %v481_v41 = vmul.f32 %v2396_v38, %v2380_v11  ;;  %v2398_v42 = vpop.eup %2397 }
 0x480   :  { %2195 = vmatpush3.msra.mxu0 %v488_v39  ;;  %v482_v44 = vmul.f32 %v2398_v42, %v2382_v12 }
 0x481   :  { %2197 = vmatmul.mubr.msk.f32.vlgmr.msra.gmra.mxu0 %vm398_vm1, %v480_v40  ;;  %2219 = vmatprep.subr.mxu0 %v787_v59 }
 0x482   :  { %v2400_v43 = vpop.eup %2399  ;;  %2199 = vmatprep.mubr.msk.f32.mxu0 %vm398_vm1, %v481_v41  ;;  %2220 = vmatpush3.msra.mxu0 %v787_v59 }
 0x483   :  { %v483_v45 = vmul.f32 %v2400_v43, %v2384_v16  ;;  %v2402_v46 = vpop.eup %2401  ;;  %2221 = vmatprep.subr.mxu0 %v786_v60 }
 0x484   :  { %v484_v51 = vmul.f32 %v2402_v46, %v2386_v18  ;;  %2222 = vmatpush3.msra.mxu0 %v786_v60 }
 0x485   :  { %2200 = vmatmul.mubr.msk.f32.gmra.mxu0 %vm398_vm1, %v482_v44  ;;  %2223 = vmatprep.subr.mxu0 %v785_v61 }
 0x486   :  { %v2404_v50 = vpop.eup %2403  ;;  %2202 = vmatprep.mubr.msk.f32.mxu0 %vm398_vm1, %v483_v45  ;;  %2224 = vmatpush3.msra.mxu0 %v785_v61 }
 0x487   :  { %v485_v53 = vmul.f32 %v2404_v50, %v2388_v22  ;;  %v2406_v56 = vpop.eup %2405 }
 0x488   :  { %v486_v57 = vmul.f32 %v2406_v56, %v2390_v23 }
 0x489   :  { %2203 = vmatmul.mubr.msk.f32.gmra.mxu0 %vm398_vm1, %v484_v51 }
 0x48a   :  { %2205 = vmatprep.mubr.msk.f32.mxu0 %vm398_vm1, %v485_v53 }
 0x48d   :  { %2206 = vmatmul.mubr.msk.f32.gmra.mxu0 %vm398_vm1, %v486_v57 }
 0x541   :  { %v2198_v62 = vpop.f32.mrf.mxu0 }
 0x542   :  { %v623_v11 = vmul.f32 %v2198_v62, %v2637_v55  ;;  %v784_v62 = vld [vmem:[%s3124_s11] sm:$0xff] }
 0x543   :  { %v583_v63 = vpop.f32.mrf.mxu0  ;;  %2225 = vmatprep.subr.mxu0 %v784_v62 }
 0x544   :  { %v622_v10 = vmul.f32 %v583_v63, %v2637_v55  ;;  %v637_v24 = vsel %vm95_vm0, %v623_v11, 0.0  ;;  %2226 = vmatpush3.msra.mxu0 %v784_v62 }
 0x545   :  { %v2201_v2 = vpop.f32.mrf.mxu0 }
 0x546   :  { %v625_v7 = vmul.f32 %v2201_v2, %v2622_v47  ;;  %v630_v21 = vsel %vm95_vm0, %v622_v10, 0.0  ;;  %v1977_v10 = vld [vmem:[%s3122_s9] ss:$0 sm:$0xff] }
 0x547   :  { %v593_v3 = vpop.f32.mrf.mxu0 }
 0x548   :  { %v624_v5 = vmul.f32 %v593_v3, %v2622_v47  ;;  %v638_v18 = vsel %vm95_vm0, %v625_v7, 0.0 }
 0x549   :  { %v2204_v8 = vpop.f32.mrf.mxu0  ;;  %v639_v30 = vadd.f32 %v638_v18, %v637_v24  ;;  %v1978_v18 = vld [vmem:[%s3123_s10] ss:$0 sm:$0xff]  ;;  %v908_v24 = vld [vmem:[%s3126_s13 + $0x70] sm:$0xff] }
 0x54a   :  { %v627_v12 = vmul.f32 %v2204_v8, %v2624_v48  ;;  %v631_v15 = vsel %vm95_vm0, %v624_v5, 0.0 }
 0x54b   :  { %v603_v14 = vpop.f32.mrf.mxu0  ;;  %v632_v26 = vadd.f32 %v631_v15, %v630_v21 }
 0x54c   :  { %v626_v16 = vmul.f32 %v603_v14, %v2624_v48  ;;  %v640_v27 = vsel %vm95_vm0, %v627_v12, 0.0 }
 0x54d   :  { %v2207_v19 = vpop.f32.mrf.mxu0  ;;  %v641_v34 = vadd.f32 %v640_v27, %v639_v30  ;;  %v906_v27 = vld [vmem:[%s3126_s13 + $0x60] sm:$0xff]  ;;  %v904_v30 = vld [vmem:[%s3126_s13 + $0x50] sm:$0xff] }
 0x54e   :  { %v633_v22 = vsel %vm95_vm0, %v626_v16, 0.0  ;;  %v629_v23 = vmul.f32 %v2207_v19, %v2626_v49 }
 0x54f   :  { %v613_v29 = vpop.f32.mrf.mxu0  ;;  %v634_v32 = vadd.f32 %v633_v22, %v632_v26  ;;  %v907_v26 = vld [vmem:[%s3126_s13 + $0x68] sm:$0xff] }
 0x550   :  { %v628_v31 = vmul.f32 %v613_v29, %v2626_v49  ;;  %v642_v33 = vsel %vm95_vm0, %v629_v23, 0.0  ;;  %v909_v23 = vld [vmem:[%s3126_s13 + $0x78] sm:$0xff] }
 0x551   :  { %v643_v54 = vadd.f32 %v642_v33, %v641_v34  ;;  %2230 = vmatprep.subr.mxu1 %v909_v23  ;;  %v905_v29 = vld [vmem:[%s3126_s13 + $0x58] sm:$0xff]  ;;  %v900_v34 = vld [vmem:[%s3126_s13 + $0x30] sm:$0xff] }
 0x552   :  { %v635_v35 = vsel %vm95_vm0, %v628_v31, 0.0  ;;  %v903_v31 = vld [vmem:[%s3126_s13 + $0x48] sm:$0xff]  ;;  %v901_v33 = vld [vmem:[%s3126_s13 + $0x38] sm:$0xff] }
 0x553   :  { %v636_v36 = vadd.f32 %v635_v35, %v634_v32  ;;  %v902_v32 = vld [vmem:[%s3126_s13 + $0x40] sm:$0xff]  ;;  %v899_v35 = vld [vmem:[%s3126_s13 + $0x28] sm:$0xff] }
 0x555   :  { %2216 = vmatprep.mubr.msk.f32.mxu1 %vm95_vm0, %v636_v36  ;;  %v898_v36 = vld [vmem:[%s3126_s13 + $0x20] sm:$0xff] }
 0x556   :  { %2217 = vmatmul.mubr.msk.f32.vlgmr.msra.gmra.mxu1 %vm95_vm0, %v643_v54  ;;  %v897_v54 = vld [vmem:[%s3126_s13 + $0x18] sm:$0xff] }
 0x557   :  { %2231 = vmatpush3.msra.mxu1 %v909_v23 }
 0x558   :  { %2232 = vmatprep.subr.mxu1 %v908_v24 }
 0x559   :  { %2233 = vmatpush3.msra.mxu1 %v908_v24 }
 0x55a   :  { %2234 = vmatprep.subr.mxu1 %v907_v26 }
 0x55b   :  { %2235 = vmatpush3.msra.mxu1 %v907_v26 }
 0x55c   :  { %2236 = vmatprep.subr.mxu1 %v906_v27 }
 0x55d   :  { %2237 = vmatpush3.msra.mxu1 %v906_v27 }
 0x55e   :  { %2238 = vmatprep.subr.mxu1 %v905_v29 }
 0x55f   :  { %2239 = vmatpush3.msra.mxu1 %v905_v29 }
 0x560   :  { %2240 = vmatprep.subr.mxu1 %v904_v30 }
 0x561   :  { %2241 = vmatpush3.msra.mxu1 %v904_v30 }
 0x562   :  { %2242 = vmatprep.subr.mxu1 %v903_v31 }
 0x563   :  { %2243 = vmatpush3.msra.mxu1 %v903_v31  ;;  %v1990_v31 = vld [vmem:[%s3118_s5 + $0x38] sm:$0xff] }
 0x564   :  { %2244 = vmatprep.subr.mxu1 %v902_v32  ;;  %2265 = vmatprep.subr.mxu0 %v1990_v31 }
 0x565   :  { %2245 = vmatpush3.msra.mxu1 %v902_v32  ;;  %v1989_v32 = vld [vmem:[%s3118_s5 + $0x30] sm:$0xff] }
 0x566   :  { %2246 = vmatprep.subr.mxu1 %v901_v33 }
 0x567   :  { %2247 = vmatpush3.msra.mxu1 %v901_v33  ;;  %v1988_v33 = vld [vmem:[%s3118_s5 + $0x28] sm:$0xff] }
 0x568   :  { %2248 = vmatprep.subr.mxu1 %v900_v34 }
 0x569   :  { %2249 = vmatpush3.msra.mxu1 %v900_v34  ;;  %v1987_v34 = vld [vmem:[%s3118_s5 + $0x20] sm:$0xff] }
 0x56a   :  { %2250 = vmatprep.subr.mxu1 %v899_v35 }
 0x56b   :  { %2251 = vmatpush3.msra.mxu1 %v899_v35 }
 0x56c   :  { %2252 = vmatprep.subr.mxu1 %v898_v36 }
 0x56d   :  { %2253 = vmatpush3.msra.mxu1 %v898_v36 }
 0x56e   :  { %2254 = vmatprep.subr.mxu1 %v897_v54 }
 0x56f   :  { %2255 = vmatpush3.msra.mxu1 %v897_v54 }
 0x616   :  { %v2218_v37 = vpop.f32.mrf.mxu1 }
 0x617   :  { %v730_v38 = vadd.f32 %v2218_v37, %v2589_v1  ;;  %v896_v37 = vld [vmem:[%s3126_s13 + $0x10] sm:$0xff] }
 0x618   :  { %v720_v39 = vpop.f32.mrf.mxu1  ;;  %2256 = vmatprep.subr.mxu1 %v896_v37 }
 0x619   :  { %v2779_v40 = vadd.f32 %v1976_v52, %v730_v38  ;;  %v729_v41 = vadd.f32 %v720_v39, %v2584_v0  ;;  %2257 = vmatpush3.msra.mxu1 %v896_v37  ;;  %v894_v38 = vld [vmem:[%s3126_s13] sm:$0xff] }
 0x61a   :  { %v1979_v39 = vld [vmem:[%s3125_s12] ss:$0 sm:$0xff] }
 0x61b   :  { %v2782_v42 = vadd.f32 %v1976_v52, %v729_v41  ;;  %v745_v43 = vsel %vm95_vm0, %v2779_v40, 0.0  ;;  %v895_v52 = vld [vmem:[%s3126_s13 + $0x8] sm:$0xff] }
 0x61c   :  { %746 = vadd.xlane.f32.xlu0 %v745_v43  ;;  %2258 = vmatprep.subr.mxu1 %v895_v52 }
 0x61d   :  { %v742_v44 = vsel %vm95_vm0, %v2782_v42, 0.0  ;;  %2259 = vmatpush3.msra.mxu1 %v895_v52 }
 0x61e   :  { %743 = vadd.xlane.f32.xlu1 %v742_v44  ;;  %2260 = vmatprep.subr.mxu1 %v894_v38 }
 0x61f   :  { %2261 = vmatpush3.msra.mxu1 %v894_v38 }
 0x6a5   :  { %v747_v45 = vpop.xlane.xlu0 %746 }
 0x6a6   :  { %v749_v46 = vmul.f32 0.03125, %v747_v45 }
 0x6a7   :  { %v744_v50 = vpop.xlane.xlu1 %743 }
 0x6a8   :  { %v751_v1 = vsub.f32 %v2779_v40, %v749_v46  ;;  %v748_v51 = vmul.f32 0.03125, %v744_v50 }
 0x6aa   :  { %v750_v53 = vsub.f32 %v2782_v42, %v748_v51  ;;  %v753_v56 = vmul.f32 %v751_v1, %v751_v1 }
 0x6ac   :  { %v757_v0 = vsel %vm95_vm0, %v753_v56, 0.0  ;;  %v752_v57 = vmul.f32 %v750_v53, %v750_v53 }
 0x6ad   :  { %758 = vadd.xlane.f32.xlu1 %v757_v0 }
 0x6ae   :  { %v754_v58 = vsel %vm95_vm0, %v752_v57, 0.0 }
 0x6af   :  { %755 = vadd.xlane.f32.xlu0 %v754_v58 }
 0x736   :  { %v759_v63 = vpop.xlane.xlu1 %758 }
 0x737   :  { %v761_v2 = vmul.f32 0.03125, %v759_v63 }
 0x738   :  { %v756_v3 = vpop.xlane.xlu0 %755 }
 0x739   :  { %v763_v5 = vadd.f32 1e-05, %v761_v2  ;;  %v760_v7 = vmul.f32 0.03125, %v756_v3 }
 0x73b   :  { %2407 = vrsqrt.f32 %v763_v5  ;;  %v762_v8 = vadd.f32 1e-05, %v760_v7 }
 0x73d   :  { %2409 = vrsqrt.f32 %v762_v8 }
 0x748   :  { %v2408_v11 = vpop.eup %2407 }
 0x749   :  { %v773_v12 = vmul.f32 %v2408_v11, %v1977_v10 }
 0x74a   :  { %v2410_v14 = vpop.eup %2409 }
 0x74b   :  { %v772_v15 = vmul.f32 %v2410_v14, %v1977_v10  ;;  %v775_v16 = vmul.f32 %v773_v12, %v751_v1  ;;  %v1982_v10 = vld [vmem:[%s3127_s14] ss:$0 sm:$0xff] }
 0x74d   :  { %v774_v19 = vmul.f32 %v772_v15, %v750_v53  ;;  %v783_v22 = vadd.f32 %v1978_v18, %v775_v16 }
 0x74f   :  { %v782_v21 = vadd.f32 %v1978_v18, %v774_v19 }
 0x751   :  { %2227 = vmatprep.mubr.msk.f32.mxu0 %vm95_vm0, %v782_v21 }
 0x752   :  { %2228 = vmatmul.mubr.msk.f32.vlgmr.msra.gmra.mxu0 %vm95_vm0, %v783_v22 }
 0x753   :  { %2266 = vmatpush3.msra.mxu0 %v1990_v31 }
 0x754   :  { %2267 = vmatprep.subr.mxu0 %v1989_v32 }
 0x755   :  { %2268 = vmatpush3.msra.mxu0 %v1989_v32 }
 0x756   :  { %2269 = vmatprep.subr.mxu0 %v1988_v33 }
 0x757   :  { %2270 = vmatpush3.msra.mxu0 %v1988_v33 }
 0x758   :  { %2271 = vmatprep.subr.mxu0 %v1987_v34 }
 0x759   :  { %2272 = vmatpush3.msra.mxu0 %v1987_v34 }
 0x812   :  { %v2229_v41 = vpop.f32.mrf.mxu0 }
 0x813   :  { %v873_v43 = vadd.f32 %v2229_v41, %v1979_v39 }
 0x814   :  { %v867_v44 = vpop.f32.mrf.mxu0 }
 0x815   :  { %v877_v45 = vmul.f32 %v873_v43, %v873_v43  ;;  %v868_v46 = vadd.f32 %v1979_v39, %v867_v44  ;;  %v1985_v39 = vld [vmem:[%s3116_s3 + $0x1] ss:$0 sm:$0xff] }
 0x817   :  { %v879_v50 = vmul.f32 %v877_v45, %v873_v43  ;;  %v876_v1 = vmul.f32 %v868_v46, %v868_v46 }
 0x819   :  { %v881_v51 = vmul.f32 0.044715, %v879_v50  ;;  %v878_v53 = vmul.f32 %v876_v1, %v868_v46  ;;  %v1986_v50 = vld [vmem:[%s3117_s4 + $0x1] ss:$0 sm:$0xff] }
 0x81b   :  { %v883_v56 = vadd.f32 %v881_v51, %v873_v43  ;;  %v880_v0 = vmul.f32 0.044715, %v878_v53 }
 0x81d   :  { %v885_v57 = vmul.f32 0.7978846, %v883_v56  ;;  %v882_v58 = vadd.f32 %v880_v0, %v868_v46  ;;  %v1992_v56 = vld [vmem:[%s3119_s6 + $0x1] ss:$0 sm:$0xff] }
 0x81f   :  { %2411 = vtanh.f32 %v885_v57  ;;  %v884_v59 = vmul.f32 0.7978846, %v882_v58 }
 0x821   :  { %2413 = vtanh.f32 %v884_v59 }
 0x82c   :  { %v2412_v60 = vpop.eup %2411 }
 0x82d   :  { %v889_v61 = vadd.f32 1.0, %v2412_v60 }
 0x82e   :  { %v2414_v62 = vpop.eup %2413 }
 0x82f   :  { %v888_v63 = vadd.f32 1.0, %v2414_v62  ;;  %v891_v2 = vmul.f32 0.5, %v889_v61 }
 0x831   :  { %v890_v3 = vmul.f32 0.5, %v888_v63  ;;  %v893_v7 = vmul.f32 %v891_v2, %v873_v43 }
 0x833   :  { %v892_v5 = vmul.f32 %v890_v3, %v868_v46 }
 0x835   :  { %2262 = vmatprep.mubr.f32.mxu1 %v892_v5 }
 0x836   :  { %2263 = vmatmul.mubr.f32.vlgmr.msra.gmra.mxu1 %v893_v7 }
 0x8f6   :  { %v2264_v8 = vpop.f32.mrf.mxu1 }
 0x8f7   :  { %v986_v11 = vadd.f32 %v2264_v8, %v2779_v40 }
 0x8f8   :  { %v976_v12 = vpop.f32.mrf.mxu1 }
 0x8f9   :  { %v2867_v14 = vadd.f32 %v1982_v10, %v986_v11  ;;  %v985_v15 = vadd.f32 %v976_v12, %v2782_v42 }
 0x8fb   :  { %v2870_v16 = vadd.f32 %v1982_v10, %v985_v15  ;;  %v1003_v18 = vsel %vm95_vm0, %v2867_v14, 0.0 }
 0x8fc   :  { %1004 = vadd.xlane.f32.xlu1 %v1003_v18 }
 0x8fd   :  { %v1000_v19 = vsel %vm95_vm0, %v2870_v16, 0.0 }
 0x8fe   :  { %1001 = vadd.xlane.f32.xlu0 %v1000_v19 }
 0x985   :  { %v1005_v21 = vpop.xlane.xlu1 %1004 }
 0x986   :  { %v1007_v22 = vmul.f32 0.03125, %v1005_v21 }
 0x987   :  { %v1002_v23 = vpop.xlane.xlu0 %1001 }
 0x988   :  { %v1009_v40 = vsub.f32 %v2867_v14, %v1007_v22  ;;  %v1006_v24 = vmul.f32 0.03125, %v1002_v23 }
 0x98a   :  { %v1008_v26 = vsub.f32 %v2870_v16, %v1006_v24  ;;  %v1011_v27 = vmul.f32 %v1009_v40, %v1009_v40 }
 0x98c   :  { %v1015_v42 = vsel %vm95_vm0, %v1011_v27, 0.0  ;;  %v1010_v29 = vmul.f32 %v1008_v26, %v1008_v26 }
 0x98d   :  { %1016 = vadd.xlane.f32.xlu1 %v1015_v42 }
 0x98e   :  { %v1012_v30 = vsel %vm95_vm0, %v1010_v29, 0.0 }
 0x98f   :  { %1013 = vadd.xlane.f32.xlu0 %v1012_v30 }
 0xa16   :  { %v1017_v35 = vpop.xlane.xlu1 %1016 }
 0xa17   :  { %v1019_v36 = vmul.f32 0.03125, %v1017_v35 }
 0xa18   :  { %v1014_v54 = vpop.xlane.xlu0 %1013 }
 0xa19   :  { %v1021_v37 = vadd.f32 1e-05, %v1019_v36  ;;  %v1018_v52 = vmul.f32 0.03125, %v1014_v54 }
 0xa1b   :  { %2415 = vrsqrt.f32 %v1021_v37  ;;  %v1020_v38 = vadd.f32 1e-05, %v1018_v52 }
 0xa1d   :  { %2417 = vrsqrt.f32 %v1020_v38 }
 0xa28   :  { %v2416_v41 = vpop.eup %2415 }
 0xa29   :  { %v1031_v43 = vmul.f32 %v2416_v41, %v1985_v39 }
 0xa2a   :  { %v2418_v44 = vpop.eup %2417 }
 0xa2b   :  { %v1030_v45 = vmul.f32 %v2418_v44, %v1985_v39  ;;  %v1033_v46 = vmul.f32 %v1031_v43, %v1009_v40 }
 0xa2d   :  { %v1032_v1 = vmul.f32 %v1030_v45, %v1008_v26  ;;  %v1041_v53 = vadd.f32 %v1986_v50, %v1033_v46 }
 0xa2f   :  { %v1040_v51 = vadd.f32 %v1986_v50, %v1032_v1 }
 0xa31   :  { %2273 = vmatprep.mubr.msk.f32.mxu0 %vm95_vm0, %v1040_v51 }
 0xa32   :  { %2274 = vmatmul.mubr.msk.f32.vlgmr.msra.gmra.mxu0 %vm95_vm0, %v1041_v53 }
 0xaf2   :  { %v2275_v0 = vpop.f32.mrf.mxu0 }
 0xaf3   :  { %v2903_v57 = vadd.f32 %v2275_v0, %v1992_v56 }
 0xaf4   :  { %v1127_v58 = vpop.f32.mrf.mxu0 }
 0xaf5   :  { %v2905_v59 = vadd.f32 %v1992_v56, %v1127_v58  ;;  %1148 = vrot.lane.b32.xlu0 %v2903_v57, %s2486_s2  ;;  %v1137_v63 = vmul.f32 %v2903_v57, %v2637_v55  ;;  %v1139_v3 = vmul.f32 %v2903_v57, %v2622_v47  ;;  %v1141_v7 = vmul.f32 %v2903_v57, %v2624_v48 }
 0xaf6   :  { %v1143_v10 = vmul.f32 %v2903_v57, %v2626_v49 }
 0xaf7   :  { %1146 = vrot.lane.b32.xlu1 %v2905_v59, %s2486_s2  ;;  %v1136_v60 = vmul.f32 %v2905_v59, %v2637_v55  ;;  %v1138_v2 = vmul.f32 %v2905_v59, %v2622_v47  ;;  %v1140_v5 = vmul.f32 %v2905_v59, %v2624_v48  ;;  %v1142_v8 = vmul.f32 %v2905_v59, %v2626_v49 }
 0xaf9   :  { %2280 = vmatprep.mubr.msk.f32.mxu0 %vm95_vm0, %v1136_v60 }
 0xb67   :  { %v1149_v61 = vpop.permute.xlu0 %1148 }
 0xb68   :  { %2276 = vmatprep.subr.msk.mxu0 %vm95_vm0, %v1149_v61 }
 0xb69   :  { %2277 = vmatpush3.xpose.msk.msra.mxu0 %vm95_vm0, %v1149_v61  ;;  %v1147_v62 = vpop.permute.xlu1 %1146 }
 0xb6a   :  { %2278 = vmatprep.subr.msk.mxu0 %vm95_vm0, %v1147_v62 }
 0xb6d   :  { %2279 = vmatpush3.xpose.msk.msra.mxu0 %vm95_vm0, %v1147_v62 }
 0xb70   :  { %2281 = vmatmul.mubr.msk.f32.vlgmr.msra.gmra.mxu0 %vm95_vm0, %v1137_v63 }
 0xb71   :  { %2283 = vmatprep.mubr.msk.f32.mxu0 %vm95_vm0, %v1138_v2 }
 0xb74   :  { %2284 = vmatmul.mubr.msk.f32.gmra.mxu0 %vm95_vm0, %v1139_v3 }
 0xb75   :  { %2286 = vmatprep.mubr.msk.f32.mxu0 %vm95_vm0, %v1140_v5 }
 0xb78   :  { %2287 = vmatmul.mubr.msk.f32.gmra.mxu0 %vm95_vm0, %v1141_v7 }
 0xb79   :  { %2289 = vmatprep.mubr.msk.f32.mxu0 %vm95_vm0, %v1142_v8 }
 0xb7c   :  { %2290 = vmatmul.mubr.msk.f32.gmra.mxu0 %vm95_vm0, %v1143_v10 }
 0xc30   :  { %v2282_v11 = vpop.f32.mrf.mxu0 }
 0xc31   :  { %v1250_v12 = vadd.f32 %v2282_v11, %v2672_v4 }
 0xc32   :  { %v1244_v15 = vpop.f32.mrf.mxu0 }
 0xc33   :  { %v1245_v18 = vadd.f32 %v1244_v15, %v2677_v6  ;;  %v1286_v19 = vsel %vm398_vm1, %v1250_v12, -inf }
 0xc34   :  { %1287 = vmax.xlane.f32.xlu0 %v1286_v19  ;;  %v2285_v21 = vpop.f32.mrf.mxu0 }
 0xc35   :  { %v1260_v22 = vadd.f32 %v2285_v21, %v2683_v9  ;;  %v1283_v23 = vsel %vm398_vm1, %v1245_v18, -inf }
 0xc36   :  { %v1254_v40 = vpop.f32.mrf.mxu0  ;;  %1284 = vmax.xlane.f32.xlu1 %v1283_v23 }
 0xc37   :  { %v1255_v24 = vadd.f32 %v1254_v40, %v2690_v13  ;;  %v1292_v42 = vsel %vm398_vm1, %v1260_v22, -inf }
 0xc38   :  { %v2288_v26 = vpop.f32.mrf.mxu0 }
 0xc39   :  { %v1270_v27 = vadd.f32 %v2288_v26, %v2697_v17  ;;  %v1289_v4 = vsel %vm398_vm1, %v1255_v24, -inf }
 0xc3a   :  { %v1264_v6 = vpop.f32.mrf.mxu0  ;;  %1290 = vmax.xlane.f32.xlu0 %v1289_v4  ;;  %1293 = vmax.xlane.f32.xlu1 %v1292_v42 }
 0xc3b   :  { %v1265_v29 = vadd.f32 %v1264_v6, %v2703_v20  ;;  %v1298_v32 = vsel %vm398_vm1, %v1270_v27, -inf }
 0xc3c   :  { %v2291_v30 = vpop.f32.mrf.mxu0 }
 0xc3d   :  { %v1280_v9 = vadd.f32 %v2291_v30, %v2711_v25  ;;  %v1295_v31 = vsel %vm398_vm1, %v1265_v29, -inf }
 0xc3e   :  { %v1274_v13 = vpop.f32.mrf.mxu0  ;;  %1296 = vmax.xlane.f32.xlu0 %v1295_v31  ;;  %1299 = vmax.xlane.f32.xlu1 %v1298_v32 }
 0xc3f   :  { %v1275_v17 = vadd.f32 %v1274_v13, %v2717_v28  ;;  %v1304_v34 = vsel %vm398_vm1, %v1280_v9, -inf }
 0xc41   :  { %v1301_v33 = vsel %vm398_vm1, %v1275_v17, -inf }
 0xc42   :  { %1302 = vmax.xlane.f32.xlu0 %v1301_v33  ;;  %1305 = vmax.xlane.f32.xlu1 %v1304_v34 }
 0xcbd   :  { %v1288_v35 = vpop.xlane.xlu0 %1287 }
 0xcbe   :  { %v1308_v20 = vsub.f32 %v1250_v12, %v1288_v35 }
 0xcbf   :  { %v1285_v36 = vpop.xlane.xlu1 %1284 }
 0xcc0   :  { %v1317_v54 = vmul.f32 1.442695, %v1308_v20  ;;  %v1307_v25 = vsub.f32 %v1245_v18, %v1285_v36 }
 0xcc2   :  { %2419 = vpow2.f32 %v1317_v54  ;;  %v1315_v37 = vmul.f32 1.442695, %v1307_v25 }
 0xcc3   :  { %v1291_v52 = vpop.xlane.xlu0 %1290  ;;  %v1294_v38 = vpop.xlane.xlu1 %1293 }
 0xcc4   :  { %2421 = vpow2.f32 %v1315_v37  ;;  %v1309_v39 = vsub.f32 %v1255_v24, %v1291_v52  ;;  %v1310_v41 = vsub.f32 %v1260_v22, %v1294_v38 }
 0xcc6   :  { %v1319_v43 = vmul.f32 1.442695, %v1309_v39  ;;  %v1321_v28 = vmul.f32 1.442695, %v1310_v41  ;;  %v2016_v39 = vld [vmem:[%s3120_s7 + $0x38] sm:$0xff]  ;;  %v2015_v41 = vld [vmem:[%s3120_s7 + $0x30] sm:$0xff] }
 0xcc7   :  { %v1297_v44 = vpop.xlane.xlu0 %1296  ;;  %v1300_v45 = vpop.xlane.xlu1 %1299  ;;  %2308 = vmatprep.subr.mxu1 %v2016_v39 }
 0xcc8   :  { %2423 = vpow2.f32 %v1319_v43  ;;  %v1311_v46 = vsub.f32 %v1265_v29, %v1297_v44  ;;  %v1312_v50 = vsub.f32 %v1270_v27, %v1300_v45  ;;  %2309 = vmatpush3.msra.mxu1 %v2016_v39  ;;  %v2014_v43 = vld [vmem:[%s3120_s7 + $0x28] sm:$0xff] }
 0xcc9   :  { %2425 = vpow2.f32 %v1321_v28  ;;  %2310 = vmatprep.subr.mxu1 %v2015_v41  ;;  %v2013_v28 = vld [vmem:[%s3120_s7 + $0x20] sm:$0xff] }
 0xcca   :  { %v1323_v1 = vmul.f32 1.442695, %v1311_v46  ;;  %v1325_v51 = vmul.f32 1.442695, %v1312_v50  ;;  %2311 = vmatpush3.msra.mxu1 %v2015_v41 }
 0xccb   :  { %v1303_v53 = vpop.xlane.xlu0 %1302  ;;  %v1306_v56 = vpop.xlane.xlu1 %1305  ;;  %2312 = vmatprep.subr.mxu1 %v2014_v43 }
 0xccc   :  { %2427 = vpow2.f32 %v1323_v1  ;;  %v1313_v0 = vsub.f32 %v1275_v17, %v1303_v53  ;;  %v1314_v58 = vsub.f32 %v1280_v9, %v1306_v56  ;;  %2313 = vmatpush3.msra.mxu1 %v2014_v43 }
 0xccd   :  { %2429 = vpow2.f32 %v1325_v51  ;;  %2314 = vmatprep.subr.mxu1 %v2013_v28 }
 0xcce   :  { %v1327_v60 = vmul.f32 1.442695, %v1313_v0  ;;  %v1329_v61 = vmul.f32 1.442695, %v1314_v58  ;;  %2315 = vmatpush3.msra.mxu1 %v2013_v28 }
 0xccf   :  { %v2420_v62 = vpop.eup %2419 }
 0xcd0   :  { %2431 = vpow2.f32 %v1327_v60  ;;  %v1334_v63 = vsel %vm398_vm1, %v2420_v62, 0.0 }
 0xcd1   :  { %v2422_v2 = vpop.eup %2421  ;;  %2433 = vpow2.f32 %v1329_v61  ;;  %1335 = vadd.xlane.f32.xlu1 %v1334_v63 }
 0xcd2   :  { %v1331_v3 = vsel %vm398_vm1, %v2422_v2, 0.0 }
 0xcd3   :  { %1332 = vadd.xlane.f32.xlu0 %v1331_v3 }
 0xcd5   :  { %v2424_v5 = vpop.eup %2423 }
 0xcd6   :  { %v2426_v7 = vpop.eup %2425  ;;  %v1337_v8 = vsel %vm398_vm1, %v2424_v5, 0.0 }
 0xcd7   :  { %1338 = vadd.xlane.f32.xlu0 %v1337_v8  ;;  %v1340_v10 = vsel %vm398_vm1, %v2426_v7, 0.0 }
 0xcd8   :  { %1341 = vadd.xlane.f32.xlu1 %v1340_v10 }
 0xcd9   :  { %v2428_v11 = vpop.eup %2427 }
 0xcda   :  { %v2430_v12 = vpop.eup %2429  ;;  %v1343_v15 = vsel %vm398_vm1, %v2428_v11, 0.0 }
 0xcdb   :  { %1344 = vadd.xlane.f32.xlu0 %v1343_v15  ;;  %v1346_v18 = vsel %vm398_vm1, %v2430_v12, 0.0 }
 0xcdc   :  { %1347 = vadd.xlane.f32.xlu1 %v1346_v18 }
 0xcdd   :  { %v2432_v19 = vpop.eup %2431 }
 0xcde   :  { %v2434_v21 = vpop.eup %2433  ;;  %v1349_v22 = vsel %vm398_vm1, %v2432_v19, 0.0 }
 0xcdf   :  { %1350 = vadd.xlane.f32.xlu0 %v1349_v22  ;;  %v1352_v23 = vsel %vm398_vm1, %v2434_v21, 0.0 }
 0xce0   :  { %1353 = vadd.xlane.f32.xlu1 %v1352_v23 }
 0xcf1   :  { %1371 = vrot.lane.b32.xlu1 %v2905_v59, %s2487_s18 }
 0xcf5   :  { %1373 = vrot.lane.b32.xlu0 %v2903_v57, %s2487_s18 }
 0xd5a   :  { %v1336_v40 = vpop.xlane.xlu1 %1335 }
 0xd5c   :  { %v1333_v24 = vpop.xlane.xlu0 %1332 }
 0xd5d   :  { %2435 = vrcp.f32 %v1333_v24 }
 0xd5e   :  { %2437 = vrcp.f32 %v1336_v40  ;;  %v2020_v40 = vld [vmem:[%s3121_s8 + $0x1] ss:$0 sm:$0xff]  ;;  %s1939_s8 = sshll.u32 %s2488_s22, 4  ;;  %s1940_s8 = int_to_ptr.vmem [resolvable:$true] %s1939_s8 }
 0xd5f   :  { %p2468_p1 = scmp.lt.s32.totalorder %s1940_s8, %s1940_s8 }
 0xd60   :  { %v1339_v26 = vpop.xlane.xlu0 %1338 }
 0xd61   :  { %2439 = vrcp.f32 %v1339_v26  ;;  %v1342_v27 = vpop.xlane.xlu1 %1341 }
 0xd62   :  { %2441 = vrcp.f32 %v1342_v27 }
 0xd64   :  { %v1345_v4 = vpop.xlane.xlu0 %1344 }
 0xd65   :  { %2443 = vrcp.f32 %v1345_v4  ;;  %v1348_v42 = vpop.xlane.xlu1 %1347 }
 0xd66   :  { %2445 = vrcp.f32 %v1348_v42 }
 0xd68   :  { %v1351_v6 = vpop.xlane.xlu0 %1350 }
 0xd69   :  { %2447 = vrcp.f32 %v1351_v6  ;;  %v1354_v29 = vpop.xlane.xlu1 %1353 }
 0xd6a   :  { %v2436_v30 = vpop.eup %2435  ;;  %2449 = vrcp.f32 %v1354_v29 }
 0xd6b   :  { %v1363_v59 = vmul.f32 %v2436_v30, %v2422_v2  ;;  %v2438_v9 = vpop.eup %2437 }
 0xd6c   :  { %v1374_v57 = vpop.permute.xlu0 %1373  ;;  %v1364_v13 = vmul.f32 %v2438_v9, %v2420_v62 }
 0xd6d   :  { %2292 = vmatprep.subr.mxu0 %v1374_v57  ;;  %2296 = vmatprep.mubr.msk.f32.mxu0 %vm398_vm1, %v1363_v59  ;;  %v1372_v32 = vpop.permute.xlu1 %1371 }
 0xd6e   :  { %v2440_v31 = vpop.eup %2439  ;;  %2293 = vmatpush3.msra.mxu0 %v1374_v57 }
 0xd6f   :  { %2294 = vmatprep.subr.mxu0 %v1372_v32  ;;  %v1365_v17 = vmul.f32 %v2440_v31, %v2424_v5  ;;  %v2442_v33 = vpop.eup %2441 }
 0xd70   :  { %2295 = vmatpush3.msra.mxu0 %v1372_v32  ;;  %v1366_v35 = vmul.f32 %v2442_v33, %v2426_v7  ;;  %v2027_v33 = vld [vmem:[%s3124_s11 + $0x30] sm:$0xff] }
 0xd71   :  { %2297 = vmatmul.mubr.msk.f32.vlgmr.msra.gmra.mxu0 %vm398_vm1, %v1364_v13 }
 0xd72   :  { %v2444_v34 = vpop.eup %2443  ;;  %2299 = vmatprep.mubr.msk.f32.mxu0 %vm398_vm1, %v1365_v17  ;;  %v2028_v17 = vld [vmem:[%s3124_s11 + $0x38] sm:$0xff] }
 0xd73   :  { %v1367_v20 = vmul.f32 %v2444_v34, %v2428_v11  ;;  %v2446_v36 = vpop.eup %2445  ;;  %2319 = vmatprep.subr.mxu1 %v2028_v17  ;;  %v2026_v34 = vld [vmem:[%s3124_s11 + $0x28] sm:$0xff] }
 0xd74   :  { %v1368_v25 = vmul.f32 %v2446_v36, %v2430_v12 }
 0xd75   :  { %2300 = vmatmul.mubr.msk.f32.gmra.mxu0 %vm398_vm1, %v1366_v35  ;;  %v2025_v35 = vld [vmem:[%s3124_s11 + $0x20] sm:$0xff] }
 0xd76   :  { %v2448_v54 = vpop.eup %2447  ;;  %2302 = vmatprep.mubr.msk.f32.mxu0 %vm398_vm1, %v1367_v20 }
 0xd77   :  { %v1369_v37 = vmul.f32 %v2448_v54, %v2432_v19  ;;  %v2450_v52 = vpop.eup %2449 }
 0xd78   :  { %v1370_v38 = vmul.f32 %v2450_v52, %v2434_v21 }
 0xd79   :  { %2303 = vmatmul.mubr.msk.f32.gmra.mxu0 %vm398_vm1, %v1368_v25 }
 0xd7a   :  { %2305 = vmatprep.mubr.msk.f32.mxu0 %vm398_vm1, %v1369_v37 }
 0xd7d   :  { %2306 = vmatmul.mubr.msk.f32.gmra.mxu0 %vm398_vm1, %v1370_v38  ;;  %v2023_v38 = vld [vmem:[%s3122_s9 + $0x1] ss:$0 sm:$0xff] }
 0xe31   :  { %v2298_v44 = vpop.f32.mrf.mxu0 }
 0xe32   :  { %v1507_v0 = vmul.f32 %v2298_v44, %v2637_v55 }
 0xe33   :  { %v1467_v45 = vpop.f32.mrf.mxu0 }
 0xe34   :  { %v1506_v56 = vmul.f32 %v1467_v45, %v2637_v55  ;;  %v1521_v7 = vsel %vm95_vm0, %v1507_v0, 0.0  ;;  %v2024_v45 = vld [vmem:[%s3123_s10 + $0x1] ss:$0 sm:$0xff] }
 0xe35   :  { %v2301_v46 = vpop.f32.mrf.mxu0  ;;  %v2045_v0 = vld [vmem:[%s3126_s13 + $0xe0] sm:$0xff] }
 0xe36   :  { %v1509_v51 = vmul.f32 %v2301_v46, %v2622_v47  ;;  %v1514_v3 = vsel %vm95_vm0, %v1506_v56, 0.0  ;;  %v2046_v56 = vld [vmem:[%s3126_s13 + $0xe8] sm:$0xff] }
 0xe37   :  { %v1477_v50 = vpop.f32.mrf.mxu0 }
 0xe38   :  { %v1508_v1 = vmul.f32 %v1477_v50, %v2622_v47  ;;  %v1522_v63 = vsel %vm95_vm0, %v1509_v51, 0.0  ;;  %v2048_v51 = vld [vmem:[%s3126_s13 + $0xf8] sm:$0xff] }
 0xe39   :  { %v2304_v53 = vpop.f32.mrf.mxu0  ;;  %v1523_v11 = vadd.f32 %v1522_v63, %v1521_v7  ;;  %2330 = vmatprep.subr.mxu0 %v2048_v51  ;;  %v2040_v63 = vld [vmem:[%s3126_s13 + $0xb8] sm:$0xff]  ;;  %v2035_v7 = vld [vmem:[%s3126_s13 + $0x90] sm:$0xff] }
 0xe3a   :  { %v1511_v58 = vmul.f32 %v2304_v53, %v2624_v48  ;;  %v1515_v61 = vsel %vm95_vm0, %v1508_v1, 0.0  ;;  %2331 = vmatpush3.msra.mxu0 %v2048_v51  ;;  %v2047_v53 = vld [vmem:[%s3126_s13 + $0xf0] sm:$0xff]  ;;  %v2051_v51 = vld [vmem:[%s3128_s15] ss:$0 sm:$0xff]  ;;  %s2463_s15 = scalar_lea.vmem %s1940_s8, 256 }
 0xe3b   :  { %v1487_v60 = vpop.f32.mrf.mxu0  ;;  %v1516_v8 = vadd.f32 %v1515_v61, %v1514_v3  ;;  %2332 = vmatprep.subr.mxu0 %v2047_v53  ;;  %v2042_v61 = vld [vmem:[%s3126_s13 + $0xc8] sm:$0xff]  ;;  %p2464_p0 = scmp.ne.s32.totalorder %s1940_s8, %s2463_s15  ;;  %p2469_p2 = scmp.lt.s32.totalorder %s2463_s15, %s2463_s15 }
 0xe3c   :  { %v1510_v62 = vmul.f32 %v1487_v60, %v2624_v48  ;;  %v1524_v55 = vsel %vm95_vm0, %v1511_v58, 0.0  ;;  %2333 = vmatpush3.msra.mxu0 %v2047_v53  ;;  %v2044_v58 = vld [vmem:[%s3126_s13 + $0xd8] sm:$0xff]  ;;  %v2043_v60 = vld [vmem:[%s3126_s13 + $0xd0] sm:$0xff]  ;;  %v2038_v3 = vld [vmem:[%s3126_s13 + $0xa8] sm:$0xff] }
 0xe3d   :  { %v2307_v2 = vpop.f32.mrf.mxu0  ;;  %v1525_v18 = vadd.f32 %v1524_v55, %v1523_v11  ;;  %2334 = vmatprep.subr.mxu0 %v2046_v56  ;;  %v2033_v55 = vld [vmem:[%s3126_s13 + $0x80] sm:$0xff]  ;;  %p2470_p3 = por %p2469_p2, %p2468_p1 }
 0xe3e   :  { %v1517_v5 = vsel %vm95_vm0, %v1510_v62, 0.0  ;;  %v1513_v47 = vmul.f32 %v2307_v2, %v2626_v49  ;;  %2335 = vmatpush3.msra.mxu0 %v2046_v56  ;;  %v2041_v62 = vld [vmem:[%s3126_s13 + $0xc0] sm:$0xff]  ;;  %v2039_v2 = vld [vmem:[%s3126_s13 + $0xb0] sm:$0xff] }
 0xe3f   :  { %v1497_v10 = vpop.f32.mrf.mxu0  ;;  %v1518_v15 = vadd.f32 %v1517_v5, %v1516_v8  ;;  %2336 = vmatprep.subr.mxu0 %v2045_v0  ;;  %v2037_v5 = vld [vmem:[%s3126_s13 + $0xa0] sm:$0xff]  ;;  %v2034_v8 = vld [vmem:[%s3126_s13 + $0x88] sm:$0xff]  ;;  %p2471_p4 = pnand %p2470_p3, %p2464_p0 }
 0xe40   :  { %v1512_v12 = vmul.f32 %v1497_v10, %v2626_v49  ;;  %v1526_v48 = vsel %vm95_vm0, %v1513_v47, 0.0  ;;  %2337 = vmatpush3.msra.mxu0 %v2045_v0  ;;  %v2036_v47 = vld [vmem:[%s3126_s13 + $0x98] sm:$0xff]  ;;  %v2030_v10 = vld [vmem:[%s3125_s12 + $0x1] ss:$0 sm:$0xff] }
 0xe41   :  { %v1527_v22 = vadd.f32 %v1526_v48, %v1525_v18  ;;  %2338 = vmatprep.subr.mxu0 %v2044_v58 }
 0xe42   :  { %v1519_v19 = vsel %vm95_vm0, %v1512_v12, 0.0  ;;  %2339 = vmatpush3.msra.mxu0 %v2044_v58  ;;  %v2052_v58 = vld [vmem:[%s3129_s16] ss:$0 sm:$0xff] }
 0xe43   :  { %v1520_v21 = vadd.f32 %v1519_v19, %v1518_v15  ;;  %2340 = vmatprep.subr.mxu0 %v2043_v60 }
 0xe44   :  { %2341 = vmatpush3.msra.mxu0 %v2043_v60 }
 0xe45   :  { %2316 = vmatprep.mubr.msk.f32.mxu1 %vm95_vm0, %v1520_v21  ;;  %2342 = vmatprep.subr.mxu0 %v2042_v61 }
 0xe46   :  { %2317 = vmatmul.mubr.msk.f32.vlgmr.msra.gmra.mxu1 %vm95_vm0, %v1527_v22  ;;  %2343 = vmatpush3.msra.mxu0 %v2042_v61 }
 0xe47   :  { %2320 = vmatpush3.msra.mxu1 %v2028_v17  ;;  %2344 = vmatprep.subr.mxu0 %v2041_v62 }
 0xe48   :  { %2321 = vmatprep.subr.mxu1 %v2027_v33  ;;  %2345 = vmatpush3.msra.mxu0 %v2041_v62 }
 0xe49   :  { %2322 = vmatpush3.msra.mxu1 %v2027_v33  ;;  %2346 = vmatprep.subr.mxu0 %v2040_v63 }
 0xe4a   :  { %2323 = vmatprep.subr.mxu1 %v2026_v34  ;;  %2347 = vmatpush3.msra.mxu0 %v2040_v63 }
 0xe4b   :  { %2324 = vmatpush3.msra.mxu1 %v2026_v34  ;;  %2348 = vmatprep.subr.mxu0 %v2039_v2 }
 0xe4c   :  { %2325 = vmatprep.subr.mxu1 %v2025_v35  ;;  %2349 = vmatpush3.msra.mxu0 %v2039_v2 }
 0xe4d   :  { %2326 = vmatpush3.msra.mxu1 %v2025_v35  ;;  %2350 = vmatprep.subr.mxu0 %v2038_v3 }
 0xe4e   :  { %2351 = vmatpush3.msra.mxu0 %v2038_v3 }
 0xe4f   :  { %2352 = vmatprep.subr.mxu0 %v2037_v5 }
 0xe50   :  { %2353 = vmatpush3.msra.mxu0 %v2037_v5 }
 0xe51   :  { %2354 = vmatprep.subr.mxu0 %v2036_v47 }
 0xe52   :  { %2355 = vmatpush3.msra.mxu0 %v2036_v47 }
 0xe53   :  { %2356 = vmatprep.subr.mxu0 %v2035_v7 }
 0xe54   :  { %2357 = vmatpush3.msra.mxu0 %v2035_v7 }
 0xe55   :  { %2358 = vmatprep.subr.mxu0 %v2034_v8 }
 0xe56   :  { %2359 = vmatpush3.msra.mxu0 %v2034_v8 }
 0xe57   :  { %2360 = vmatprep.subr.mxu0 %v2033_v55 }
 0xe58   :  { %2361 = vmatpush3.msra.mxu0 %v2033_v55 }
 0xf06   :  { %v2318_v23 = vpop.f32.mrf.mxu1 }
 0xf07   :  { %v1615_v24 = vadd.f32 %v2318_v23, %v2867_v14 }
 0xf08   :  { %v1605_v49 = vpop.f32.mrf.mxu1 }
 0xf09   :  { %v3009_v26 = vadd.f32 %v2020_v40, %v1615_v24  ;;  %v1614_v27 = vadd.f32 %v1605_v49, %v2870_v16 }
 0xf0b   :  { %v3012_v4 = vadd.f32 %v2020_v40, %v1614_v27  ;;  %v1633_v42 = vsel %vm95_vm0, %v3009_v26, 0.0 }
 0xf0c   :  { %1634 = vadd.xlane.f32.xlu0 %v1633_v42 }
 0xf0d   :  { %v1630_v6 = vsel %vm95_vm0, %v3012_v4, 0.0 }
 0xf0e   :  { %1631 = vadd.xlane.f32.xlu1 %v1630_v6 }
 0xf95   :  { %v1635_v29 = vpop.xlane.xlu0 %1634 }
 0xf96   :  { %v1637_v30 = vmul.f32 0.03125, %v1635_v29 }
 0xf97   :  { %v1632_v59 = vpop.xlane.xlu1 %1631 }
 0xf98   :  { %v1639_v14 = vsub.f32 %v3009_v26, %v1637_v30  ;;  %v1636_v9 = vmul.f32 0.03125, %v1632_v59 }
 0xf9a   :  { %v1638_v57 = vsub.f32 %v3012_v4, %v1636_v9  ;;  %v1641_v31 = vmul.f32 %v1639_v14, %v1639_v14 }
 0xf9c   :  { %v1645_v16 = vsel %vm95_vm0, %v1641_v31, 0.0  ;;  %v1640_v32 = vmul.f32 %v1638_v57, %v1638_v57 }
 0xf9d   :  { %1646 = vadd.xlane.f32.xlu1 %v1645_v16 }
 0xf9e   :  { %v1642_v13 = vsel %vm95_vm0, %v1640_v32, 0.0  ;;  %v2050_v32 = vld [vmem:[%s3127_s14 + $0x1] ss:$0 sm:$0xff] }
 0xf9f   :  { %1643 = vadd.xlane.f32.xlu0 %v1642_v13 }
0x1026   :  { %v1647_v20 = vpop.xlane.xlu1 %1646 }
0x1027   :  { %v1649_v36 = vmul.f32 0.03125, %v1647_v20 }
0x1028   :  { %v1644_v54 = vpop.xlane.xlu0 %1643 }
0x1029   :  { %v1651_v25 = vadd.f32 1e-05, %v1649_v36  ;;  %v1648_v37 = vmul.f32 0.03125, %v1644_v54 }
0x102b   :  { %2451 = vrsqrt.f32 %v1651_v25  ;;  %v1650_v52 = vadd.f32 1e-05, %v1648_v37 }
0x102d   :  { %2453 = vrsqrt.f32 %v1650_v52 }
0x1038   :  { %v2452_v39 = vpop.eup %2451 }
0x1039   :  { %v1661_v41 = vmul.f32 %v2452_v39, %v2023_v38 }
0x103a   :  { %v2454_v43 = vpop.eup %2453 }
0x103b   :  { %v1660_v28 = vmul.f32 %v2454_v43, %v2023_v38  ;;  %v1663_v44 = vmul.f32 %v1661_v41, %v1639_v14 }
0x103d   :  { %v1662_v46 = vmul.f32 %v1660_v28, %v1638_v57  ;;  %v1671_v1 = vadd.f32 %v2024_v45, %v1663_v44 }
0x103f   :  { %v1670_v50 = vadd.f32 %v2024_v45, %v1662_v46 }
0x1041   :  { %2327 = vmatprep.mubr.msk.f32.mxu1 %vm95_vm0, %v1670_v50 }
0x1042   :  { %2328 = vmatmul.mubr.msk.f32.vlgmr.msra.gmra.mxu1 %vm95_vm0, %v1671_v1 }
0x1102   :  { %v2329_v11 = vpop.f32.mrf.mxu1 }
0x1103   :  { %v1763_v12 = vadd.f32 %v2329_v11, %v2030_v10 }
0x1104   :  { %v1757_v15 = vpop.f32.mrf.mxu1 }
0x1105   :  { %v1767_v48 = vmul.f32 %v1763_v12, %v1763_v12  ;;  %v1758_v18 = vadd.f32 %v2030_v10, %v1757_v15 }
0x1107   :  { %v1769_v19 = vmul.f32 %v1767_v48, %v1763_v12  ;;  %v1766_v21 = vmul.f32 %v1758_v18, %v1758_v18 }
0x1109   :  { %v1771_v22 = vmul.f32 0.044715, %v1769_v19  ;;  %v1768_v23 = vmul.f32 %v1766_v21, %v1758_v18 }
0x110b   :  { %v1773_v40 = vadd.f32 %v1771_v22, %v1763_v12  ;;  %v1770_v24 = vmul.f32 0.044715, %v1768_v23 }
0x110d   :  { %v1775_v49 = vmul.f32 0.7978846, %v1773_v40  ;;  %v1772_v27 = vadd.f32 %v1770_v24, %v1758_v18 }
0x110f   :  { %2455 = vtanh.f32 %v1775_v49  ;;  %v1774_v42 = vmul.f32 0.7978846, %v1772_v27 }
0x1111   :  { %2457 = vtanh.f32 %v1774_v42 }
0x111c   :  { %v2456_v6 = vpop.eup %2455 }
0x111d   :  { %v1779_v29 = vadd.f32 1.0, %v2456_v6 }
0x111e   :  { %v2458_v30 = vpop.eup %2457 }
0x111f   :  { %v1778_v59 = vadd.f32 1.0, %v2458_v30  ;;  %v1781_v14 = vmul.f32 0.5, %v1779_v29 }
0x1121   :  { %v1780_v9 = vmul.f32 0.5, %v1778_v59  ;;  %v1783_v31 = vmul.f32 %v1781_v14, %v1763_v12 }
0x1123   :  { %v1782_v57 = vmul.f32 %v1780_v9, %v1758_v18 }
0x1125   :  { %2362 = vmatprep.mubr.f32.mxu0 %v1782_v57 }
0x1126   :  { %2363 = vmatmul.mubr.f32.vlgmr.msra.gmra.mxu0 %v1783_v31 }
0x11e6   :  { %v2364_v16 = vpop.f32.mrf.mxu0 }
0x11e7   :  { %v1877_v13 = vadd.f32 %v2364_v16, %v3009_v26 }
0x11e8   :  { %v1867_v17 = vpop.f32.mrf.mxu0 }
0x11e9   :  { %v1876_v33 = vadd.f32 %v1867_v17, %v3012_v4  ;;  %v1887_v34 = vadd.f32 %v2050_v32, %v1877_v13 }
0x11eb   :  { %v1893_v35 = vsel %vm95_vm0, %v1887_v34, 0.0  ;;  %v1886_v20 = vadd.f32 %v2050_v32, %v1876_v33 }
0x11ec   :  { %1894 = vadd.xlane.f32.xlu1 %v1893_v35 }
0x11ed   :  { %v1890_v36 = vsel %vm95_vm0, %v1886_v20, 0.0 }
0x11ee   :  { %1891 = vadd.xlane.f32.xlu0 %v1890_v36 }
0x1275   :  { %v1895_v54 = vpop.xlane.xlu1 %1894 }
0x1276   :  { %v1897_v25 = vmul.f32 0.03125, %v1895_v54 }
0x1277   :  { %v1892_v37 = vpop.xlane.xlu0 %1891 }
0x1278   :  { %v1899_v52 = vsub.f32 %v1887_v34, %v1897_v25  ;;  %v1896_v38 = vmul.f32 0.03125, %v1892_v37 }
0x127a   :  { %v1898_v39 = vsub.f32 %v1886_v20, %v1896_v38  ;;  %v1901_v41 = vmul.f32 %v1899_v52, %v1899_v52 }
0x127c   :  { %v1905_v26 = vsel %vm95_vm0, %v1901_v41, 0.0  ;;  %v1900_v43 = vmul.f32 %v1898_v39, %v1898_v39 }
0x127d   :  { %1906 = vadd.xlane.f32.xlu1 %v1905_v26 }
0x127e   :  { %v1902_v4 = vsel %vm95_vm0, %v1900_v43, 0.0 }
0x127f   :  { %1903 = vadd.xlane.f32.xlu0 %v1902_v4 }
0x1306   :  { %v1907_v28 = vpop.xlane.xlu1 %1906 }
0x1307   :  { %v1909_v44 = vmul.f32 0.03125, %v1907_v28 }
0x1308   :  { %v1904_v45 = vpop.xlane.xlu0 %1903 }
0x1309   :  { %v1911_v46 = vadd.f32 1e-05, %v1909_v44  ;;  %v1908_v50 = vmul.f32 0.03125, %v1904_v45 }
0x130b   :  { %2459 = vrsqrt.f32 %v1911_v46  ;;  %v1910_v1 = vadd.f32 1e-05, %v1908_v50 }
0x130d   :  { %2461 = vrsqrt.f32 %v1910_v1 }
0x1318   :  { %v2460_v53 = vpop.eup %2459 }
0x1319   :  { %v1921_v56 = vmul.f32 %v2460_v53, %v2051_v51 }
0x131a   :  { %v2462_v0 = vpop.eup %2461 }
0x131b   :  { %v1920_v60 = vmul.f32 %v2462_v0, %v2051_v51  ;;  %v1923_v61 = vmul.f32 %v1921_v56, %v1899_v52 }
0x131d   :  { %v1922_v62 = vmul.f32 %v1920_v60, %v1898_v39  ;;  %v1931_v63 = vadd.f32 %v2052_v58, %v1923_v61 }
0x131f   :  { %v1930_v2 = vadd.f32 %v2052_v58, %v1922_v62  ;;  %1933 = vst.msk [vmem:[#allocation2 + $0x8] sm:$0xff] %vm95_vm0, %v1931_v63 }
0x1321   :  { %1932 = vst.msk [vmem:[#allocation2] sm:$0xff] %vm95_vm0, %v1930_v2 }
0x1322   :  { %2474 = shalt.err (!%p2471_p4)
}
0x1323   :  { %s2489_s16 = smov 128   ;;  %s2490_s23 = smov 8  }
0x1324   :  { %1945 = dma.vmem_to_hbm [thread:$0]  %s1940_s8, 256, %s3130_s17, [#allocation3], %s2489_s16, %s2489_s16, %s2490_s23  }
0x1325   :  { %2483 = dma.done.wait [#allocation3], 256  }
0x1326   :  { %2484 = vsyncadd [#allocation3], 4294967040 }
0x1327   :  { %1949 = vsyncpa [#allocation3], 1 }

</bundles_post_ra>
